<compile_context>
chip_gen: v6e
topology: v6e:2x2x1
jax: 0.10.0
libtpu: 0.0.40
codegen_flags: <defaults>
</compile_context>

<pallas_src>
import math
import functools

import jax
import jax.numpy as jnp
from jax import lax
from jax.experimental import pallas as pl
from jax.experimental.pallas import tpu as pltpu


# ----------------------------------------------------------------------------
# helpers (mirror the PyTorch module's __init__ logic)
# ----------------------------------------------------------------------------
def find_optimal_cnn1d_padding(L_in, K, S):
    """Smallest padding P>=0 such that (L_in + 2P - K) % S == 0."""
    for P in range(0, K + S):
        if (L_in + 2 * P - K) % S == 0:
            L_red = (L_in + 2 * P - K) // S + 1
            return L_red, P
    raise ValueError("no valid padding found")


def positional_encoding(d_embedding, max_len):
    position = jnp.arange(max_len, dtype=jnp.float32)[:, None]
    div_term = jnp.exp(
        jnp.arange(0, d_embedding, 2, dtype=jnp.float32)
        * (-math.log(10000.0) / d_embedding)
    )
    pe = jnp.zeros((max_len, d_embedding), dtype=jnp.float32)
    pe = pe.at[:, 0::2].set(jnp.sin(position * div_term))
    pe = pe.at[:, 1::2].set(jnp.cos(position * div_term))
    return pe


def _layernorm(x, gamma, beta, eps=1e-6):
    # PyTorch spec uses nn.LayerNorm(d_embedding, eps=1e-06)
    mu = jnp.mean(x, axis=-1, keepdims=True)
    xc = x - mu
    var = jnp.mean(xc * xc, axis=-1, keepdims=True)
    return xc * lax.rsqrt(var + eps) * gamma + beta


# ----------------------------------------------------------------------------
# Single fused Pallas kernel: conv(+PE) + num_mha_layers x MHAEncoderBlock
# ----------------------------------------------------------------------------
def _encoder_fused_kernel(patches_ref, wc_ref, peb_ref,
                          win_ref, bin_ref, wo_ref, bo_ref,
                          g1_ref, be1_ref,
                          w1_ref, b1_ref, w2_ref, b2_ref,
                          g2_ref, be2_ref,
                          o_ref,
                          *, num_heads, num_layers, d_embedding):
    D = d_embedding
    dh = D // num_heads
    scale = 1.0 / math.sqrt(dh)

    # --- Conv1d (im2col matmul) + (conv bias + positional encoding) epilogue ---
    patches = patches_ref[0]                                       # [L, K*A] bf16
    h = jnp.dot(patches, wc_ref[...],
                preferred_element_type=jnp.float32) + peb_ref[...]  # [L, D] f32

    # --- MHA encoder blocks (static unroll; weights indexed per layer) ---------
    for l in range(num_layers):
        hb = h.astype(jnp.bfloat16)
        # fused q/k/v projection: [L, 3D]
        qkv = jnp.dot(hb, win_ref[l],
                      preferred_element_type=jnp.float32) + bin_ref[l]

        # slice & cast q/k/v once per layer; 1/sqrt(dh) folded into q here
        q = (qkv[:, 0:D] * scale).astype(jnp.bfloat16)
        k = qkv[:, D:2 * D].astype(jnp.bfloat16)
        v = qkv[:, 2 * D:3 * D].astype(jnp.bfloat16)

        heads = []
        for hd in range(num_heads):
            c = hd * dh
            qh = q[:, c:c + dh]
            kh = k[:, c:c + dh]
            vh = v[:, c:c + dh]
            # q @ k^T without an explicit transpose: contract last dims of both.
            s = lax.dot_general(qh, kh, (((1,), (1,)), ((), ())),
                                preferred_element_type=jnp.float32)   # [L, L]
            s = s - jnp.max(s, axis=-1, keepdims=True)
            e = jnp.exp(s)
            denom = jnp.sum(e, axis=-1, keepdims=True)
            oh = jnp.dot(e.astype(jnp.bfloat16), vh,
                         preferred_element_type=jnp.float32)          # [L, dh]
            # deferred softmax normalization on the small head output (EUP recip)
            heads.append(oh * pl.reciprocal(denom, approx=True))

        attn = jnp.concatenate(heads, axis=-1)                        # [L, D]
        attn = jnp.dot(attn.astype(jnp.bfloat16), wo_ref[l],
                       preferred_element_type=jnp.float32) + bo_ref[l]

        # residual + LayerNorm1 (dropout p=0 -> identity)
        x = _layernorm(h + attn, g1_ref[l], be1_ref[l])

        # MLP: Linear -> (Dropout p=0) -> ReLU -> Linear
        m = jnp.dot(x.astype(jnp.bfloat16), w1_ref[l],
                    preferred_element_type=jnp.float32) + b1_ref[l]
        m = jnp.maximum(m, 0.0)
        m = jnp.dot(m.astype(jnp.bfloat16), w2_ref[l],
                    preferred_element_type=jnp.float32) + b2_ref[l]

        # residual + LayerNorm2
        h = _layernorm(x + m, g2_ref[l], be2_ref[l])

    o_ref[0] = h


# ----------------------------------------------------------------------------
# wrapper: im2col glue + single pallas_call
# ----------------------------------------------------------------------------
def encoder_forward(params, x, *, kernel, stride, padding, num_heads):
    B, L_in, A = x.shape
    D = params["conv_w"].shape[0]
    L_red = (L_in + 2 * padding - kernel) // stride + 1
    NL = params["win"].shape[0]
    F = params["w1"].shape[2]
    KA = kernel * A

    # im2col (glue): strided windows -> [B, L_red, K*A]
    x_pad = jnp.pad(x, ((0, 0), (padding, padding), (0, 0)))
    idx = jnp.arange(L_red)[:, None] * stride + jnp.arange(kernel)[None, :]
    patches = x_pad[:, idx, :].reshape(B, L_red, KA).astype(jnp.bfloat16)

    # conv weight [D, A, K] -> matmul weight [(K*A), D], (k, a) flatten order
    w_mat = jnp.transpose(params["conv_w"], (2, 1, 0)).reshape(KA, D)
    w_mat = w_mat.astype(jnp.bfloat16)

    # pre-add conv bias into the positional-encoding table (one epilogue add)
    pe = positional_encoding(D, max_len=L_red)
    peb = (pe + params["conv_b"][None, :]).astype(jnp.float32)        # [L_red, D]

    # bf16 for MXU operands; biases / LN params stay f32
    win = params["win"].astype(jnp.bfloat16)
    wo = params["wo"].astype(jnp.bfloat16)
    w1 = params["w1"].astype(jnp.bfloat16)
    w2 = params["w2"].astype(jnp.bfloat16)

    def fixed(shape):
        nd = len(shape)
        return pl.BlockSpec(shape, lambda b, _nd=nd: (0,) * _nd)

    kern = functools.partial(_encoder_fused_kernel, num_heads=num_heads,
                             num_layers=NL, d_embedding=D)

    return pl.pallas_call(
        kern,
        out_shape=jax.ShapeDtypeStruct((B, L_red, D), jnp.float32),
        grid=(B,),
        in_specs=[
            pl.BlockSpec((1, L_red, KA), lambda b: (b, 0, 0)),   # patches (per batch)
            fixed((KA, D)),                                      # conv weight
            fixed((L_red, D)),                                   # PE + conv bias
            fixed((NL, D, 3 * D)), fixed((NL, 1, 3 * D)),        # in_proj W/b
            fixed((NL, D, D)), fixed((NL, 1, D)),                # out_proj W/b
            fixed((NL, 1, D)), fixed((NL, 1, D)),                # LN1 gamma/beta
            fixed((NL, D, F)), fixed((NL, 1, F)),                # MLP W1/b1
            fixed((NL, F, D)), fixed((NL, 1, D)),                # MLP W2/b2
            fixed((NL, 1, D)), fixed((NL, 1, D)),                # LN2 gamma/beta
        ],
        out_specs=pl.BlockSpec((1, L_red, D), lambda b: (b, 0, 0)),
        compiler_params=pltpu.CompilerParams(
            dimension_semantics=("parallel",)),
    )(patches, w_mat, peb,
      win, params["bin"], wo, params["bo"],
      params["g1"], params["be1"],
      w1, params["b1"], w2, params["b2"],
      params["g2"], params["be2"])


# ----------------------------------------------------------------------------
# parameter init (stacked per-layer weights, y = x @ W + b layout)
# ----------------------------------------------------------------------------
def init_encoder_params(key, d_embedding, kernel, num_heads, num_mha_layers,
                        d_ff, alphabet_size):
    D, F, A, K, NL = d_embedding, d_ff, alphabet_size, kernel, num_mha_layers
    ks = jax.random.split(key, 7)
    return {
        "conv_w": jax.random.normal(ks[0], (D, A, K), jnp.float32) * 0.05,
        "conv_b": jax.random.normal(ks[1], (D,), jnp.float32) * 0.01,
        # fused q/k/v in-projection (stacked over layers)
        "win": jax.random.normal(ks[2], (NL, D, 3 * D), jnp.float32) * 0.05,
        "bin": jnp.zeros((NL, 1, 3 * D), jnp.float32),
        "wo": jax.random.normal(ks[3], (NL, D, D), jnp.float32) * 0.05,
        "bo": jnp.zeros((NL, 1, D), jnp.float32),
        "g1": jnp.ones((NL, 1, D), jnp.float32),
        "be1": jnp.zeros((NL, 1, D), jnp.float32),
        "w1": jax.random.normal(ks[4], (NL, D, F), jnp.float32) * 0.05,
        "b1": jax.random.normal(ks[5], (NL, 1, F), jnp.float32) * 0.01,
        "w2": jax.random.normal(ks[6], (NL, F, D), jnp.float32) * 0.05,
        "b2": jnp.zeros((NL, 1, D), jnp.float32),
        "g2": jnp.ones((NL, 1, D), jnp.float32),
        "be2": jnp.zeros((NL, 1, D), jnp.float32),
    }


# ----------------------------------------------------------------------------
if __name__ == "__main__":
    # small, Encoder-consistent hyper-parameters
    batch = 2
    length_seq = 16
    alphabet_size = 8
    d_embedding = 32
    kernel = 3
    stride = 1
    num_heads = 4
    num_mha_layers = 2
    d_ff = 64
    # dropout = 0 (inference semantics -> identity)

    l_red, padding = find_optimal_cnn1d_padding(length_seq, kernel, stride)

    key = jax.random.PRNGKey(0)
    pkey, xkey = jax.random.split(key)
    params = init_encoder_params(pkey, d_embedding, kernel, num_heads,
                                 num_mha_layers, d_ff, alphabet_size)
    x = jax.random.normal(xkey, (batch, length_seq, alphabet_size), jnp.float32)

    fwd = jax.jit(functools.partial(encoder_forward, kernel=kernel,
                                    stride=stride, padding=padding,
                                    num_heads=num_heads))
    out = fwd(params, x)
    out = jax.block_until_ready(out)

    assert out.shape == (batch, l_red, d_embedding), out.shape
    assert bool(jnp.all(jnp.isfinite(out)))
    print("KERNEL_OK")
</pallas_src>

<mosaic_0001>
module attributes {stable_mosaic.version = 11 : i64} {
  func.func @_encoder_fused_kernel(%arg0: i32, %arg1: memref<1x14x24xbf16, #tpu.memory_space<vmem>>, %arg2: memref<24x32xbf16, #tpu.memory_space<vmem>>, %arg3: memref<14x32xf32, #tpu.memory_space<vmem>>, %arg4: memref<2x32x96xbf16, #tpu.memory_space<vmem>>, %arg5: memref<2x1x96xf32, #tpu.memory_space<vmem>>, %arg6: memref<2x32x32xbf16, #tpu.memory_space<vmem>>, %arg7: memref<2x1x32xf32, #tpu.memory_space<vmem>>, %arg8: memref<2x1x32xf32, #tpu.memory_space<vmem>>, %arg9: memref<2x1x32xf32, #tpu.memory_space<vmem>>, %arg10: memref<2x32x64xbf16, #tpu.memory_space<vmem>>, %arg11: memref<2x1x64xf32, #tpu.memory_space<vmem>>, %arg12: memref<2x64x32xbf16, #tpu.memory_space<vmem>>, %arg13: memref<2x1x32xf32, #tpu.memory_space<vmem>>, %arg14: memref<2x1x32xf32, #tpu.memory_space<vmem>>, %arg15: memref<2x1x32xf32, #tpu.memory_space<vmem>>, %arg16: memref<1x14x32xf32, #tpu.memory_space<vmem>>) attributes {dimension_semantics = [#tpu.dimension_semantics<parallel>], iteration_bounds = array<i64: 2>, scalar_prefetch = 0 : i64, scratch_operands = 0 : i64, tpu.core_type = #tpu.core_type<tc>, window_params = [{transform_indices = @transform_0, window_bounds = array<i64: 1, 14, 24>}, {pipeline_mode = #tpu.pipeline_mode<synchronous>, transform_indices = @transform_1, window_bounds = array<i64: 24, 32>}, {pipeline_mode = #tpu.pipeline_mode<synchronous>, transform_indices = @transform_2, window_bounds = array<i64: 14, 32>}, {pipeline_mode = #tpu.pipeline_mode<synchronous>, transform_indices = @transform_3, window_bounds = array<i64: 2, 32, 96>}, {pipeline_mode = #tpu.pipeline_mode<synchronous>, transform_indices = @transform_4, window_bounds = array<i64: 2, 1, 96>}, {pipeline_mode = #tpu.pipeline_mode<synchronous>, transform_indices = @transform_5, window_bounds = array<i64: 2, 32, 32>}, {pipeline_mode = #tpu.pipeline_mode<synchronous>, transform_indices = @transform_6, window_bounds = array<i64: 2, 1, 32>}, {pipeline_mode = #tpu.pipeline_mode<synchronous>, transform_indices = @transform_7, window_bounds = array<i64: 2, 1, 32>}, {pipeline_mode = #tpu.pipeline_mode<synchronous>, transform_indices = @transform_8, window_bounds = array<i64: 2, 1, 32>}, {pipeline_mode = #tpu.pipeline_mode<synchronous>, transform_indices = @transform_9, window_bounds = array<i64: 2, 32, 64>}, {pipeline_mode = #tpu.pipeline_mode<synchronous>, transform_indices = @transform_10, window_bounds = array<i64: 2, 1, 64>}, {pipeline_mode = #tpu.pipeline_mode<synchronous>, transform_indices = @transform_11, window_bounds = array<i64: 2, 64, 32>}, {pipeline_mode = #tpu.pipeline_mode<synchronous>, transform_indices = @transform_12, window_bounds = array<i64: 2, 1, 32>}, {pipeline_mode = #tpu.pipeline_mode<synchronous>, transform_indices = @transform_13, window_bounds = array<i64: 2, 1, 32>}, {pipeline_mode = #tpu.pipeline_mode<synchronous>, transform_indices = @transform_14, window_bounds = array<i64: 2, 1, 32>}, {transform_indices = @transform_15, window_bounds = array<i64: 1, 14, 32>}]} {
    %c0 = arith.constant 0 : index
    %c0_0 = arith.constant 0 : index
    %c0_1 = arith.constant 0 : index
    %0 = vector.load %arg1[%c0, %c0_0, %c0_1] : memref<1x14x24xbf16, #tpu.memory_space<vmem>>, vector<1x14x24xbf16>
    %1 = vector.shape_cast %0 : vector<1x14x24xbf16> to vector<14x24xbf16>
    %c0_2 = arith.constant 0 : index
    %c0_3 = arith.constant 0 : index
    %2 = vector.load %arg2[%c0_2, %c0_3] : memref<24x32xbf16, #tpu.memory_space<vmem>>, vector<24x32xbf16>
    %cst = arith.constant dense<0.000000e+00> : vector<14x32xf32>
    %3 = tpu.matmul %1, %2, %cst {dimension_numbers = #tpu.dot_dimension_numbers<[1], [0], [0], [1], [0, 0, 1, 1], [], []>} : vector<14x24xbf16>, vector<24x32xbf16>, vector<14x32xf32> -> vector<14x32xf32>
    %c0_4 = arith.constant 0 : index
    %c0_5 = arith.constant 0 : index
    %4 = vector.load %arg3[%c0_4, %c0_5] : memref<14x32xf32, #tpu.memory_space<vmem>>, vector<14x32xf32>
    %5 = arith.addf %3, %4 : vector<14x32xf32>
    %6 = arith.truncf %5 : vector<14x32xf32> to vector<14x32xbf16>
    %c0_6 = arith.constant 0 : index
    %c0_7 = arith.constant 0 : index
    %c0_8 = arith.constant 0 : index
    %7 = vector.load %arg4[%c0_6, %c0_7, %c0_8] : memref<2x32x96xbf16, #tpu.memory_space<vmem>>, vector<1x32x96xbf16>
    %8 = vector.shape_cast %7 : vector<1x32x96xbf16> to vector<32x96xbf16>
    %cst_9 = arith.constant dense<0.000000e+00> : vector<14x96xf32>
    %9 = tpu.matmul %6, %8, %cst_9 {dimension_numbers = #tpu.dot_dimension_numbers<[1], [0], [0], [1], [0, 0, 1, 1], [], []>} : vector<14x32xbf16>, vector<32x96xbf16>, vector<14x96xf32> -> vector<14x96xf32>
    %c0_10 = arith.constant 0 : index
    %c0_11 = arith.constant 0 : index
    %c0_12 = arith.constant 0 : index
    %10 = vector.load %arg5[%c0_10, %c0_11, %c0_12] : memref<2x1x96xf32, #tpu.memory_space<vmem>>, vector<1x1x96xf32>
    %11 = vector.shape_cast %10 : vector<1x1x96xf32> to vector<1x96xf32>
    %12 = vector.broadcast %11 : vector<1x96xf32> to vector<14x96xf32>
    %13 = arith.addf %9, %12 : vector<14x96xf32>
    %14 = vector.extract_strided_slice %13 {offsets = [0, 0], sizes = [14, 32], strides = [1, 1]} : vector<14x96xf32> to vector<14x32xf32>
    %cst_13 = arith.constant 0.353553385 : f32
    %15 = vector.broadcast %cst_13 : f32 to vector<14x32xf32>
    %16 = arith.mulf %14, %15 : vector<14x32xf32>
    %17 = arith.truncf %16 : vector<14x32xf32> to vector<14x32xbf16>
    %18 = vector.extract_strided_slice %13 {offsets = [0, 32], sizes = [14, 32], strides = [1, 1]} : vector<14x96xf32> to vector<14x32xf32>
    %19 = arith.truncf %18 : vector<14x32xf32> to vector<14x32xbf16>
    %20 = vector.extract_strided_slice %13 {offsets = [0, 64], sizes = [14, 32], strides = [1, 1]} : vector<14x96xf32> to vector<14x32xf32>
    %21 = arith.truncf %20 : vector<14x32xf32> to vector<14x32xbf16>
    %22 = vector.extract_strided_slice %17 {offsets = [0, 0], sizes = [14, 8], strides = [1, 1]} : vector<14x32xbf16> to vector<14x8xbf16>
    %23 = vector.extract_strided_slice %19 {offsets = [0, 0], sizes = [14, 8], strides = [1, 1]} : vector<14x32xbf16> to vector<14x8xbf16>
    %24 = vector.extract_strided_slice %21 {offsets = [0, 0], sizes = [14, 8], strides = [1, 1]} : vector<14x32xbf16> to vector<14x8xbf16>
    %cst_14 = arith.constant dense<0.000000e+00> : vector<14x14xf32>
    %25 = tpu.matmul %22, %23, %cst_14 {dimension_numbers = #tpu.dot_dimension_numbers<[1], [1], [0], [0], [0, 0, 1, 0], [], []>} : vector<14x8xbf16>, vector<14x8xbf16>, vector<14x14xf32> -> vector<14x14xf32>
    %cst_15 = arith.constant dense<0xFF800000> : vector<14xf32>
    %26 = vector.multi_reduction <maximumf>, %25, %cst_15 [1] : vector<14x14xf32> to vector<14xf32>
    %27 = vector.shape_cast %26 : vector<14xf32> to vector<14x1xf32>
    %28 = vector.broadcast %27 : vector<14x1xf32> to vector<14x14xf32>
    %29 = arith.subf %25, %28 : vector<14x14xf32>
    %30 = math.exp %29 : vector<14x14xf32>
    %cst_16 = arith.constant dense<0.000000e+00> : vector<14xf32>
    %31 = vector.multi_reduction <add>, %30, %cst_16 [1] : vector<14x14xf32> to vector<14xf32>
    %32 = vector.shape_cast %31 : vector<14xf32> to vector<14x1xf32>
    %33 = arith.truncf %30 : vector<14x14xf32> to vector<14x14xbf16>
    %cst_17 = arith.constant dense<0.000000e+00> : vector<14x8xf32>
    %34 = tpu.matmul %33, %24, %cst_17 {dimension_numbers = #tpu.dot_dimension_numbers<[1], [0], [0], [1], [0, 0, 1, 1], [], []>} : vector<14x14xbf16>, vector<14x8xbf16>, vector<14x8xf32> -> vector<14x8xf32>
    %35 = tpu.reciprocal %32 {approx = true} : vector<14x1xf32> -> vector<14x1xf32>
    %36 = vector.broadcast %35 : vector<14x1xf32> to vector<14x8xf32>
    %37 = arith.mulf %34, %36 : vector<14x8xf32>
    %38 = vector.extract_strided_slice %17 {offsets = [0, 8], sizes = [14, 8], strides = [1, 1]} : vector<14x32xbf16> to vector<14x8xbf16>
    %39 = vector.extract_strided_slice %19 {offsets = [0, 8], sizes = [14, 8], strides = [1, 1]} : vector<14x32xbf16> to vector<14x8xbf16>
    %40 = vector.extract_strided_slice %21 {offsets = [0, 8], sizes = [14, 8], strides = [1, 1]} : vector<14x32xbf16> to vector<14x8xbf16>
    %cst_18 = arith.constant dense<0.000000e+00> : vector<14x14xf32>
    %41 = tpu.matmul %38, %39, %cst_18 {dimension_numbers = #tpu.dot_dimension_numbers<[1], [1], [0], [0], [0, 0, 1, 0], [], []>} : vector<14x8xbf16>, vector<14x8xbf16>, vector<14x14xf32> -> vector<14x14xf32>
    %cst_19 = arith.constant dense<0xFF800000> : vector<14xf32>
    %42 = vector.multi_reduction <maximumf>, %41, %cst_19 [1] : vector<14x14xf32> to vector<14xf32>
    %43 = vector.shape_cast %42 : vector<14xf32> to vector<14x1xf32>
    %44 = vector.broadcast %43 : vector<14x1xf32> to vector<14x14xf32>
    %45 = arith.subf %41, %44 : vector<14x14xf32>
    %46 = math.exp %45 : vector<14x14xf32>
    %cst_20 = arith.constant dense<0.000000e+00> : vector<14xf32>
    %47 = vector.multi_reduction <add>, %46, %cst_20 [1] : vector<14x14xf32> to vector<14xf32>
    %48 = vector.shape_cast %47 : vector<14xf32> to vector<14x1xf32>
    %49 = arith.truncf %46 : vector<14x14xf32> to vector<14x14xbf16>
    %cst_21 = arith.constant dense<0.000000e+00> : vector<14x8xf32>
    %50 = tpu.matmul %49, %40, %cst_21 {dimension_numbers = #tpu.dot_dimension_numbers<[1], [0], [0], [1], [0, 0, 1, 1], [], []>} : vector<14x14xbf16>, vector<14x8xbf16>, vector<14x8xf32> -> vector<14x8xf32>
    %51 = tpu.reciprocal %48 {approx = true} : vector<14x1xf32> -> vector<14x1xf32>
    %52 = vector.broadcast %51 : vector<14x1xf32> to vector<14x8xf32>
    %53 = arith.mulf %50, %52 : vector<14x8xf32>
    %54 = vector.extract_strided_slice %17 {offsets = [0, 16], sizes = [14, 8], strides = [1, 1]} : vector<14x32xbf16> to vector<14x8xbf16>
    %55 = vector.extract_strided_slice %19 {offsets = [0, 16], sizes = [14, 8], strides = [1, 1]} : vector<14x32xbf16> to vector<14x8xbf16>
    %56 = vector.extract_strided_slice %21 {offsets = [0, 16], sizes = [14, 8], strides = [1, 1]} : vector<14x32xbf16> to vector<14x8xbf16>
    %cst_22 = arith.constant dense<0.000000e+00> : vector<14x14xf32>
    %57 = tpu.matmul %54, %55, %cst_22 {dimension_numbers = #tpu.dot_dimension_numbers<[1], [1], [0], [0], [0, 0, 1, 0], [], []>} : vector<14x8xbf16>, vector<14x8xbf16>, vector<14x14xf32> -> vector<14x14xf32>
    %cst_23 = arith.constant dense<0xFF800000> : vector<14xf32>
    %58 = vector.multi_reduction <maximumf>, %57, %cst_23 [1] : vector<14x14xf32> to vector<14xf32>
    %59 = vector.shape_cast %58 : vector<14xf32> to vector<14x1xf32>
    %60 = vector.broadcast %59 : vector<14x1xf32> to vector<14x14xf32>
    %61 = arith.subf %57, %60 : vector<14x14xf32>
    %62 = math.exp %61 : vector<14x14xf32>
    %cst_24 = arith.constant dense<0.000000e+00> : vector<14xf32>
    %63 = vector.multi_reduction <add>, %62, %cst_24 [1] : vector<14x14xf32> to vector<14xf32>
    %64 = vector.shape_cast %63 : vector<14xf32> to vector<14x1xf32>
    %65 = arith.truncf %62 : vector<14x14xf32> to vector<14x14xbf16>
    %cst_25 = arith.constant dense<0.000000e+00> : vector<14x8xf32>
    %66 = tpu.matmul %65, %56, %cst_25 {dimension_numbers = #tpu.dot_dimension_numbers<[1], [0], [0], [1], [0, 0, 1, 1], [], []>} : vector<14x14xbf16>, vector<14x8xbf16>, vector<14x8xf32> -> vector<14x8xf32>
    %67 = tpu.reciprocal %64 {approx = true} : vector<14x1xf32> -> vector<14x1xf32>
    %68 = vector.broadcast %67 : vector<14x1xf32> to vector<14x8xf32>
    %69 = arith.mulf %66, %68 : vector<14x8xf32>
    %70 = vector.extract_strided_slice %17 {offsets = [0, 24], sizes = [14, 8], strides = [1, 1]} : vector<14x32xbf16> to vector<14x8xbf16>
    %71 = vector.extract_strided_slice %19 {offsets = [0, 24], sizes = [14, 8], strides = [1, 1]} : vector<14x32xbf16> to vector<14x8xbf16>
    %72 = vector.extract_strided_slice %21 {offsets = [0, 24], sizes = [14, 8], strides = [1, 1]} : vector<14x32xbf16> to vector<14x8xbf16>
    %cst_26 = arith.constant dense<0.000000e+00> : vector<14x14xf32>
    %73 = tpu.matmul %70, %71, %cst_26 {dimension_numbers = #tpu.dot_dimension_numbers<[1], [1], [0], [0], [0, 0, 1, 0], [], []>} : vector<14x8xbf16>, vector<14x8xbf16>, vector<14x14xf32> -> vector<14x14xf32>
    %cst_27 = arith.constant dense<0xFF800000> : vector<14xf32>
    %74 = vector.multi_reduction <maximumf>, %73, %cst_27 [1] : vector<14x14xf32> to vector<14xf32>
    %75 = vector.shape_cast %74 : vector<14xf32> to vector<14x1xf32>
    %76 = vector.broadcast %75 : vector<14x1xf32> to vector<14x14xf32>
    %77 = arith.subf %73, %76 : vector<14x14xf32>
    %78 = math.exp %77 : vector<14x14xf32>
    %cst_28 = arith.constant dense<0.000000e+00> : vector<14xf32>
    %79 = vector.multi_reduction <add>, %78, %cst_28 [1] : vector<14x14xf32> to vector<14xf32>
    %80 = vector.shape_cast %79 : vector<14xf32> to vector<14x1xf32>
    %81 = arith.truncf %78 : vector<14x14xf32> to vector<14x14xbf16>
    %cst_29 = arith.constant dense<0.000000e+00> : vector<14x8xf32>
    %82 = tpu.matmul %81, %72, %cst_29 {dimension_numbers = #tpu.dot_dimension_numbers<[1], [0], [0], [1], [0, 0, 1, 1], [], []>} : vector<14x14xbf16>, vector<14x8xbf16>, vector<14x8xf32> -> vector<14x8xf32>
    %83 = tpu.reciprocal %80 {approx = true} : vector<14x1xf32> -> vector<14x1xf32>
    %84 = vector.broadcast %83 : vector<14x1xf32> to vector<14x8xf32>
    %85 = arith.mulf %82, %84 : vector<14x8xf32>
    %86 = tpu.concatenate %37, %53, %69, %85 in 1 : vector<14x8xf32>, vector<14x8xf32>, vector<14x8xf32>, vector<14x8xf32> -> vector<14x32xf32>
    %87 = arith.truncf %86 : vector<14x32xf32> to vector<14x32xbf16>
    %c0_30 = arith.constant 0 : index
    %c0_31 = arith.constant 0 : index
    %c0_32 = arith.constant 0 : index
    %88 = vector.load %arg6[%c0_30, %c0_31, %c0_32] : memref<2x32x32xbf16, #tpu.memory_space<vmem>>, vector<1x32x32xbf16>
    %89 = vector.shape_cast %88 : vector<1x32x32xbf16> to vector<32x32xbf16>
    %cst_33 = arith.constant dense<0.000000e+00> : vector<14x32xf32>
    %90 = tpu.matmul %87, %89, %cst_33 {dimension_numbers = #tpu.dot_dimension_numbers<[1], [0], [0], [1], [0, 0, 1, 1], [], []>} : vector<14x32xbf16>, vector<32x32xbf16>, vector<14x32xf32> -> vector<14x32xf32>
    %c0_34 = arith.constant 0 : index
    %c0_35 = arith.constant 0 : index
    %c0_36 = arith.constant 0 : index
    %91 = vector.load %arg7[%c0_34, %c0_35, %c0_36] : memref<2x1x32xf32, #tpu.memory_space<vmem>>, vector<1x1x32xf32>
    %92 = vector.shape_cast %91 : vector<1x1x32xf32> to vector<1x32xf32>
    %93 = vector.broadcast %92 : vector<1x32xf32> to vector<14x32xf32>
    %94 = arith.addf %90, %93 : vector<14x32xf32>
    %95 = arith.addf %5, %94 : vector<14x32xf32>
    %c0_37 = arith.constant 0 : index
    %c0_38 = arith.constant 0 : index
    %c0_39 = arith.constant 0 : index
    %96 = vector.load %arg8[%c0_37, %c0_38, %c0_39] : memref<2x1x32xf32, #tpu.memory_space<vmem>>, vector<1x1x32xf32>
    %97 = vector.shape_cast %96 : vector<1x1x32xf32> to vector<1x32xf32>
    %c0_40 = arith.constant 0 : index
    %c0_41 = arith.constant 0 : index
    %c0_42 = arith.constant 0 : index
    %98 = vector.load %arg9[%c0_40, %c0_41, %c0_42] : memref<2x1x32xf32, #tpu.memory_space<vmem>>, vector<1x1x32xf32>
    %99 = vector.shape_cast %98 : vector<1x1x32xf32> to vector<1x32xf32>
    %cst_43 = arith.constant dense<0.000000e+00> : vector<14xf32>
    %100 = vector.multi_reduction <add>, %95, %cst_43 [1] : vector<14x32xf32> to vector<14xf32>
    %101 = vector.shape_cast %100 : vector<14xf32> to vector<14x1xf32>
    %cst_44 = arith.constant 3.200000e+01 : f32
    %102 = vector.broadcast %cst_44 : f32 to vector<14x1xf32>
    %103 = arith.divf %101, %102 : vector<14x1xf32>
    %104 = vector.broadcast %103 : vector<14x1xf32> to vector<14x32xf32>
    %105 = arith.subf %95, %104 : vector<14x32xf32>
    %106 = arith.mulf %105, %105 : vector<14x32xf32>
    %cst_45 = arith.constant dense<0.000000e+00> : vector<14xf32>
    %107 = vector.multi_reduction <add>, %106, %cst_45 [1] : vector<14x32xf32> to vector<14xf32>
    %108 = vector.shape_cast %107 : vector<14xf32> to vector<14x1xf32>
    %cst_46 = arith.constant 3.200000e+01 : f32
    %109 = vector.broadcast %cst_46 : f32 to vector<14x1xf32>
    %110 = arith.divf %108, %109 : vector<14x1xf32>
    %cst_47 = arith.constant 9.99999997E-7 : f32
    %111 = vector.broadcast %cst_47 : f32 to vector<14x1xf32>
    %112 = arith.addf %110, %111 : vector<14x1xf32>
    %113 = math.rsqrt %112 : vector<14x1xf32>
    %114 = vector.broadcast %113 : vector<14x1xf32> to vector<14x32xf32>
    %115 = arith.mulf %105, %114 : vector<14x32xf32>
    %116 = vector.broadcast %97 : vector<1x32xf32> to vector<14x32xf32>
    %117 = arith.mulf %115, %116 : vector<14x32xf32>
    %118 = vector.broadcast %99 : vector<1x32xf32> to vector<14x32xf32>
    %119 = arith.addf %117, %118 : vector<14x32xf32>
    %120 = arith.truncf %119 : vector<14x32xf32> to vector<14x32xbf16>
    %c0_48 = arith.constant 0 : index
    %c0_49 = arith.constant 0 : index
    %c0_50 = arith.constant 0 : index
    %121 = vector.load %arg10[%c0_48, %c0_49, %c0_50] : memref<2x32x64xbf16, #tpu.memory_space<vmem>>, vector<1x32x64xbf16>
    %122 = vector.shape_cast %121 : vector<1x32x64xbf16> to vector<32x64xbf16>
    %cst_51 = arith.constant dense<0.000000e+00> : vector<14x64xf32>
    %123 = tpu.matmul %120, %122, %cst_51 {dimension_numbers = #tpu.dot_dimension_numbers<[1], [0], [0], [1], [0, 0, 1, 1], [], []>} : vector<14x32xbf16>, vector<32x64xbf16>, vector<14x64xf32> -> vector<14x64xf32>
    %c0_52 = arith.constant 0 : index
    %c0_53 = arith.constant 0 : index
    %c0_54 = arith.constant 0 : index
    %124 = vector.load %arg11[%c0_52, %c0_53, %c0_54] : memref<2x1x64xf32, #tpu.memory_space<vmem>>, vector<1x1x64xf32>
    %125 = vector.shape_cast %124 : vector<1x1x64xf32> to vector<1x64xf32>
    %126 = vector.broadcast %125 : vector<1x64xf32> to vector<14x64xf32>
    %127 = arith.addf %123, %126 : vector<14x64xf32>
    %cst_55 = arith.constant 0.000000e+00 : f32
    %128 = vector.broadcast %cst_55 : f32 to vector<14x64xf32>
    %129 = arith.maximumf %127, %128 : vector<14x64xf32>
    %130 = arith.truncf %129 : vector<14x64xf32> to vector<14x64xbf16>
    %c0_56 = arith.constant 0 : index
    %c0_57 = arith.constant 0 : index
    %c0_58 = arith.constant 0 : index
    %131 = vector.load %arg12[%c0_56, %c0_57, %c0_58] : memref<2x64x32xbf16, #tpu.memory_space<vmem>>, vector<1x64x32xbf16>
    %132 = vector.shape_cast %131 : vector<1x64x32xbf16> to vector<64x32xbf16>
    %cst_59 = arith.constant dense<0.000000e+00> : vector<14x32xf32>
    %133 = tpu.matmul %130, %132, %cst_59 {dimension_numbers = #tpu.dot_dimension_numbers<[1], [0], [0], [1], [0, 0, 1, 1], [], []>} : vector<14x64xbf16>, vector<64x32xbf16>, vector<14x32xf32> -> vector<14x32xf32>
    %c0_60 = arith.constant 0 : index
    %c0_61 = arith.constant 0 : index
    %c0_62 = arith.constant 0 : index
    %134 = vector.load %arg13[%c0_60, %c0_61, %c0_62] : memref<2x1x32xf32, #tpu.memory_space<vmem>>, vector<1x1x32xf32>
    %135 = vector.shape_cast %134 : vector<1x1x32xf32> to vector<1x32xf32>
    %136 = vector.broadcast %135 : vector<1x32xf32> to vector<14x32xf32>
    %137 = arith.addf %133, %136 : vector<14x32xf32>
    %138 = arith.addf %119, %137 : vector<14x32xf32>
    %c0_63 = arith.constant 0 : index
    %c0_64 = arith.constant 0 : index
    %c0_65 = arith.constant 0 : index
    %139 = vector.load %arg14[%c0_63, %c0_64, %c0_65] : memref<2x1x32xf32, #tpu.memory_space<vmem>>, vector<1x1x32xf32>
    %140 = vector.shape_cast %139 : vector<1x1x32xf32> to vector<1x32xf32>
    %c0_66 = arith.constant 0 : index
    %c0_67 = arith.constant 0 : index
    %c0_68 = arith.constant 0 : index
    %141 = vector.load %arg15[%c0_66, %c0_67, %c0_68] : memref<2x1x32xf32, #tpu.memory_space<vmem>>, vector<1x1x32xf32>
    %142 = vector.shape_cast %141 : vector<1x1x32xf32> to vector<1x32xf32>
    %cst_69 = arith.constant dense<0.000000e+00> : vector<14xf32>
    %143 = vector.multi_reduction <add>, %138, %cst_69 [1] : vector<14x32xf32> to vector<14xf32>
    %144 = vector.shape_cast %143 : vector<14xf32> to vector<14x1xf32>
    %cst_70 = arith.constant 3.200000e+01 : f32
    %145 = vector.broadcast %cst_70 : f32 to vector<14x1xf32>
    %146 = arith.divf %144, %145 : vector<14x1xf32>
    %147 = vector.broadcast %146 : vector<14x1xf32> to vector<14x32xf32>
    %148 = arith.subf %138, %147 : vector<14x32xf32>
    %149 = arith.mulf %148, %148 : vector<14x32xf32>
    %cst_71 = arith.constant dense<0.000000e+00> : vector<14xf32>
    %150 = vector.multi_reduction <add>, %149, %cst_71 [1] : vector<14x32xf32> to vector<14xf32>
    %151 = vector.shape_cast %150 : vector<14xf32> to vector<14x1xf32>
    %cst_72 = arith.constant 3.200000e+01 : f32
    %152 = vector.broadcast %cst_72 : f32 to vector<14x1xf32>
    %153 = arith.divf %151, %152 : vector<14x1xf32>
    %cst_73 = arith.constant 9.99999997E-7 : f32
    %154 = vector.broadcast %cst_73 : f32 to vector<14x1xf32>
    %155 = arith.addf %153, %154 : vector<14x1xf32>
    %156 = math.rsqrt %155 : vector<14x1xf32>
    %157 = vector.broadcast %156 : vector<14x1xf32> to vector<14x32xf32>
    %158 = arith.mulf %148, %157 : vector<14x32xf32>
    %159 = vector.broadcast %140 : vector<1x32xf32> to vector<14x32xf32>
    %160 = arith.mulf %158, %159 : vector<14x32xf32>
    %161 = vector.broadcast %142 : vector<1x32xf32> to vector<14x32xf32>
    %162 = arith.addf %160, %161 : vector<14x32xf32>
    %163 = arith.truncf %162 : vector<14x32xf32> to vector<14x32xbf16>
    %c1 = arith.constant 1 : index
    %c0_74 = arith.constant 0 : index
    %c0_75 = arith.constant 0 : index
    %164 = vector.load %arg4[%c1, %c0_74, %c0_75] : memref<2x32x96xbf16, #tpu.memory_space<vmem>>, vector<1x32x96xbf16>
    %165 = vector.shape_cast %164 : vector<1x32x96xbf16> to vector<32x96xbf16>
    %cst_76 = arith.constant dense<0.000000e+00> : vector<14x96xf32>
    %166 = tpu.matmul %163, %165, %cst_76 {dimension_numbers = #tpu.dot_dimension_numbers<[1], [0], [0], [1], [0, 0, 1, 1], [], []>} : vector<14x32xbf16>, vector<32x96xbf16>, vector<14x96xf32> -> vector<14x96xf32>
    %c1_77 = arith.constant 1 : index
    %c0_78 = arith.constant 0 : index
    %c0_79 = arith.constant 0 : index
    %167 = vector.load %arg5[%c1_77, %c0_78, %c0_79] : memref<2x1x96xf32, #tpu.memory_space<vmem>>, vector<1x1x96xf32>
    %168 = vector.shape_cast %167 : vector<1x1x96xf32> to vector<1x96xf32>
    %169 = vector.broadcast %168 : vector<1x96xf32> to vector<14x96xf32>
    %170 = arith.addf %166, %169 : vector<14x96xf32>
    %171 = vector.extract_strided_slice %170 {offsets = [0, 0], sizes = [14, 32], strides = [1, 1]} : vector<14x96xf32> to vector<14x32xf32>
    %cst_80 = arith.constant 0.353553385 : f32
    %172 = vector.broadcast %cst_80 : f32 to vector<14x32xf32>
    %173 = arith.mulf %171, %172 : vector<14x32xf32>
    %174 = arith.truncf %173 : vector<14x32xf32> to vector<14x32xbf16>
    %175 = vector.extract_strided_slice %170 {offsets = [0, 32], sizes = [14, 32], strides = [1, 1]} : vector<14x96xf32> to vector<14x32xf32>
    %176 = arith.truncf %175 : vector<14x32xf32> to vector<14x32xbf16>
    %177 = vector.extract_strided_slice %170 {offsets = [0, 64], sizes = [14, 32], strides = [1, 1]} : vector<14x96xf32> to vector<14x32xf32>
    %178 = arith.truncf %177 : vector<14x32xf32> to vector<14x32xbf16>
    %179 = vector.extract_strided_slice %174 {offsets = [0, 0], sizes = [14, 8], strides = [1, 1]} : vector<14x32xbf16> to vector<14x8xbf16>
    %180 = vector.extract_strided_slice %176 {offsets = [0, 0], sizes = [14, 8], strides = [1, 1]} : vector<14x32xbf16> to vector<14x8xbf16>
    %181 = vector.extract_strided_slice %178 {offsets = [0, 0], sizes = [14, 8], strides = [1, 1]} : vector<14x32xbf16> to vector<14x8xbf16>
    %cst_81 = arith.constant dense<0.000000e+00> : vector<14x14xf32>
    %182 = tpu.matmul %179, %180, %cst_81 {dimension_numbers = #tpu.dot_dimension_numbers<[1], [1], [0], [0], [0, 0, 1, 0], [], []>} : vector<14x8xbf16>, vector<14x8xbf16>, vector<14x14xf32> -> vector<14x14xf32>
    %cst_82 = arith.constant dense<0xFF800000> : vector<14xf32>
    %183 = vector.multi_reduction <maximumf>, %182, %cst_82 [1] : vector<14x14xf32> to vector<14xf32>
    %184 = vector.shape_cast %183 : vector<14xf32> to vector<14x1xf32>
    %185 = vector.broadcast %184 : vector<14x1xf32> to vector<14x14xf32>
    %186 = arith.subf %182, %185 : vector<14x14xf32>
    %187 = math.exp %186 : vector<14x14xf32>
    %cst_83 = arith.constant dense<0.000000e+00> : vector<14xf32>
    %188 = vector.multi_reduction <add>, %187, %cst_83 [1] : vector<14x14xf32> to vector<14xf32>
    %189 = vector.shape_cast %188 : vector<14xf32> to vector<14x1xf32>
    %190 = arith.truncf %187 : vector<14x14xf32> to vector<14x14xbf16>
    %cst_84 = arith.constant dense<0.000000e+00> : vector<14x8xf32>
    %191 = tpu.matmul %190, %181, %cst_84 {dimension_numbers = #tpu.dot_dimension_numbers<[1], [0], [0], [1], [0, 0, 1, 1], [], []>} : vector<14x14xbf16>, vector<14x8xbf16>, vector<14x8xf32> -> vector<14x8xf32>
    %192 = tpu.reciprocal %189 {approx = true} : vector<14x1xf32> -> vector<14x1xf32>
    %193 = vector.broadcast %192 : vector<14x1xf32> to vector<14x8xf32>
    %194 = arith.mulf %191, %193 : vector<14x8xf32>
    %195 = vector.extract_strided_slice %174 {offsets = [0, 8], sizes = [14, 8], strides = [1, 1]} : vector<14x32xbf16> to vector<14x8xbf16>
    %196 = vector.extract_strided_slice %176 {offsets = [0, 8], sizes = [14, 8], strides = [1, 1]} : vector<14x32xbf16> to vector<14x8xbf16>
    %197 = vector.extract_strided_slice %178 {offsets = [0, 8], sizes = [14, 8], strides = [1, 1]} : vector<14x32xbf16> to vector<14x8xbf16>
    %cst_85 = arith.constant dense<0.000000e+00> : vector<14x14xf32>
    %198 = tpu.matmul %195, %196, %cst_85 {dimension_numbers = #tpu.dot_dimension_numbers<[1], [1], [0], [0], [0, 0, 1, 0], [], []>} : vector<14x8xbf16>, vector<14x8xbf16>, vector<14x14xf32> -> vector<14x14xf32>
    %cst_86 = arith.constant dense<0xFF800000> : vector<14xf32>
    %199 = vector.multi_reduction <maximumf>, %198, %cst_86 [1] : vector<14x14xf32> to vector<14xf32>
    %200 = vector.shape_cast %199 : vector<14xf32> to vector<14x1xf32>
    %201 = vector.broadcast %200 : vector<14x1xf32> to vector<14x14xf32>
    %202 = arith.subf %198, %201 : vector<14x14xf32>
    %203 = math.exp %202 : vector<14x14xf32>
    %cst_87 = arith.constant dense<0.000000e+00> : vector<14xf32>
    %204 = vector.multi_reduction <add>, %203, %cst_87 [1] : vector<14x14xf32> to vector<14xf32>
    %205 = vector.shape_cast %204 : vector<14xf32> to vector<14x1xf32>
    %206 = arith.truncf %203 : vector<14x14xf32> to vector<14x14xbf16>
    %cst_88 = arith.constant dense<0.000000e+00> : vector<14x8xf32>
    %207 = tpu.matmul %206, %197, %cst_88 {dimension_numbers = #tpu.dot_dimension_numbers<[1], [0], [0], [1], [0, 0, 1, 1], [], []>} : vector<14x14xbf16>, vector<14x8xbf16>, vector<14x8xf32> -> vector<14x8xf32>
    %208 = tpu.reciprocal %205 {approx = true} : vector<14x1xf32> -> vector<14x1xf32>
    %209 = vector.broadcast %208 : vector<14x1xf32> to vector<14x8xf32>
    %210 = arith.mulf %207, %209 : vector<14x8xf32>
    %211 = vector.extract_strided_slice %174 {offsets = [0, 16], sizes = [14, 8], strides = [1, 1]} : vector<14x32xbf16> to vector<14x8xbf16>
    %212 = vector.extract_strided_slice %176 {offsets = [0, 16], sizes = [14, 8], strides = [1, 1]} : vector<14x32xbf16> to vector<14x8xbf16>
    %213 = vector.extract_strided_slice %178 {offsets = [0, 16], sizes = [14, 8], strides = [1, 1]} : vector<14x32xbf16> to vector<14x8xbf16>
    %cst_89 = arith.constant dense<0.000000e+00> : vector<14x14xf32>
    %214 = tpu.matmul %211, %212, %cst_89 {dimension_numbers = #tpu.dot_dimension_numbers<[1], [1], [0], [0], [0, 0, 1, 0], [], []>} : vector<14x8xbf16>, vector<14x8xbf16>, vector<14x14xf32> -> vector<14x14xf32>
    %cst_90 = arith.constant dense<0xFF800000> : vector<14xf32>
    %215 = vector.multi_reduction <maximumf>, %214, %cst_90 [1] : vector<14x14xf32> to vector<14xf32>
    %216 = vector.shape_cast %215 : vector<14xf32> to vector<14x1xf32>
    %217 = vector.broadcast %216 : vector<14x1xf32> to vector<14x14xf32>
    %218 = arith.subf %214, %217 : vector<14x14xf32>
    %219 = math.exp %218 : vector<14x14xf32>
    %cst_91 = arith.constant dense<0.000000e+00> : vector<14xf32>
    %220 = vector.multi_reduction <add>, %219, %cst_91 [1] : vector<14x14xf32> to vector<14xf32>
    %221 = vector.shape_cast %220 : vector<14xf32> to vector<14x1xf32>
    %222 = arith.truncf %219 : vector<14x14xf32> to vector<14x14xbf16>
    %cst_92 = arith.constant dense<0.000000e+00> : vector<14x8xf32>
    %223 = tpu.matmul %222, %213, %cst_92 {dimension_numbers = #tpu.dot_dimension_numbers<[1], [0], [0], [1], [0, 0, 1, 1], [], []>} : vector<14x14xbf16>, vector<14x8xbf16>, vector<14x8xf32> -> vector<14x8xf32>
    %224 = tpu.reciprocal %221 {approx = true} : vector<14x1xf32> -> vector<14x1xf32>
    %225 = vector.broadcast %224 : vector<14x1xf32> to vector<14x8xf32>
    %226 = arith.mulf %223, %225 : vector<14x8xf32>
    %227 = vector.extract_strided_slice %174 {offsets = [0, 24], sizes = [14, 8], strides = [1, 1]} : vector<14x32xbf16> to vector<14x8xbf16>
    %228 = vector.extract_strided_slice %176 {offsets = [0, 24], sizes = [14, 8], strides = [1, 1]} : vector<14x32xbf16> to vector<14x8xbf16>
    %229 = vector.extract_strided_slice %178 {offsets = [0, 24], sizes = [14, 8], strides = [1, 1]} : vector<14x32xbf16> to vector<14x8xbf16>
    %cst_93 = arith.constant dense<0.000000e+00> : vector<14x14xf32>
    %230 = tpu.matmul %227, %228, %cst_93 {dimension_numbers = #tpu.dot_dimension_numbers<[1], [1], [0], [0], [0, 0, 1, 0], [], []>} : vector<14x8xbf16>, vector<14x8xbf16>, vector<14x14xf32> -> vector<14x14xf32>
    %cst_94 = arith.constant dense<0xFF800000> : vector<14xf32>
    %231 = vector.multi_reduction <maximumf>, %230, %cst_94 [1] : vector<14x14xf32> to vector<14xf32>
    %232 = vector.shape_cast %231 : vector<14xf32> to vector<14x1xf32>
    %233 = vector.broadcast %232 : vector<14x1xf32> to vector<14x14xf32>
    %234 = arith.subf %230, %233 : vector<14x14xf32>
    %235 = math.exp %234 : vector<14x14xf32>
    %cst_95 = arith.constant dense<0.000000e+00> : vector<14xf32>
    %236 = vector.multi_reduction <add>, %235, %cst_95 [1] : vector<14x14xf32> to vector<14xf32>
    %237 = vector.shape_cast %236 : vector<14xf32> to vector<14x1xf32>
    %238 = arith.truncf %235 : vector<14x14xf32> to vector<14x14xbf16>
    %cst_96 = arith.constant dense<0.000000e+00> : vector<14x8xf32>
    %239 = tpu.matmul %238, %229, %cst_96 {dimension_numbers = #tpu.dot_dimension_numbers<[1], [0], [0], [1], [0, 0, 1, 1], [], []>} : vector<14x14xbf16>, vector<14x8xbf16>, vector<14x8xf32> -> vector<14x8xf32>
    %240 = tpu.reciprocal %237 {approx = true} : vector<14x1xf32> -> vector<14x1xf32>
    %241 = vector.broadcast %240 : vector<14x1xf32> to vector<14x8xf32>
    %242 = arith.mulf %239, %241 : vector<14x8xf32>
    %243 = tpu.concatenate %194, %210, %226, %242 in 1 : vector<14x8xf32>, vector<14x8xf32>, vector<14x8xf32>, vector<14x8xf32> -> vector<14x32xf32>
    %244 = arith.truncf %243 : vector<14x32xf32> to vector<14x32xbf16>
    %c1_97 = arith.constant 1 : index
    %c0_98 = arith.constant 0 : index
    %c0_99 = arith.constant 0 : index
    %245 = vector.load %arg6[%c1_97, %c0_98, %c0_99] : memref<2x32x32xbf16, #tpu.memory_space<vmem>>, vector<1x32x32xbf16>
    %246 = vector.shape_cast %245 : vector<1x32x32xbf16> to vector<32x32xbf16>
    %cst_100 = arith.constant dense<0.000000e+00> : vector<14x32xf32>
    %247 = tpu.matmul %244, %246, %cst_100 {dimension_numbers = #tpu.dot_dimension_numbers<[1], [0], [0], [1], [0, 0, 1, 1], [], []>} : vector<14x32xbf16>, vector<32x32xbf16>, vector<14x32xf32> -> vector<14x32xf32>
    %c1_101 = arith.constant 1 : index
    %c0_102 = arith.constant 0 : index
    %c0_103 = arith.constant 0 : index
    %248 = vector.load %arg7[%c1_101, %c0_102, %c0_103] : memref<2x1x32xf32, #tpu.memory_space<vmem>>, vector<1x1x32xf32>
    %249 = vector.shape_cast %248 : vector<1x1x32xf32> to vector<1x32xf32>
    %250 = vector.broadcast %249 : vector<1x32xf32> to vector<14x32xf32>
    %251 = arith.addf %247, %250 : vector<14x32xf32>
    %252 = arith.addf %162, %251 : vector<14x32xf32>
    %c1_104 = arith.constant 1 : index
    %c0_105 = arith.constant 0 : index
    %c0_106 = arith.constant 0 : index
    %253 = vector.load %arg8[%c1_104, %c0_105, %c0_106] : memref<2x1x32xf32, #tpu.memory_space<vmem>>, vector<1x1x32xf32>
    %254 = vector.shape_cast %253 : vector<1x1x32xf32> to vector<1x32xf32>
    %c1_107 = arith.constant 1 : index
    %c0_108 = arith.constant 0 : index
    %c0_109 = arith.constant 0 : index
    %255 = vector.load %arg9[%c1_107, %c0_108, %c0_109] : memref<2x1x32xf32, #tpu.memory_space<vmem>>, vector<1x1x32xf32>
    %256 = vector.shape_cast %255 : vector<1x1x32xf32> to vector<1x32xf32>
    %cst_110 = arith.constant dense<0.000000e+00> : vector<14xf32>
    %257 = vector.multi_reduction <add>, %252, %cst_110 [1] : vector<14x32xf32> to vector<14xf32>
    %258 = vector.shape_cast %257 : vector<14xf32> to vector<14x1xf32>
    %cst_111 = arith.constant 3.200000e+01 : f32
    %259 = vector.broadcast %cst_111 : f32 to vector<14x1xf32>
    %260 = arith.divf %258, %259 : vector<14x1xf32>
    %261 = vector.broadcast %260 : vector<14x1xf32> to vector<14x32xf32>
    %262 = arith.subf %252, %261 : vector<14x32xf32>
    %263 = arith.mulf %262, %262 : vector<14x32xf32>
    %cst_112 = arith.constant dense<0.000000e+00> : vector<14xf32>
    %264 = vector.multi_reduction <add>, %263, %cst_112 [1] : vector<14x32xf32> to vector<14xf32>
    %265 = vector.shape_cast %264 : vector<14xf32> to vector<14x1xf32>
    %cst_113 = arith.constant 3.200000e+01 : f32
    %266 = vector.broadcast %cst_113 : f32 to vector<14x1xf32>
    %267 = arith.divf %265, %266 : vector<14x1xf32>
    %cst_114 = arith.constant 9.99999997E-7 : f32
    %268 = vector.broadcast %cst_114 : f32 to vector<14x1xf32>
    %269 = arith.addf %267, %268 : vector<14x1xf32>
    %270 = math.rsqrt %269 : vector<14x1xf32>
    %271 = vector.broadcast %270 : vector<14x1xf32> to vector<14x32xf32>
    %272 = arith.mulf %262, %271 : vector<14x32xf32>
    %273 = vector.broadcast %254 : vector<1x32xf32> to vector<14x32xf32>
    %274 = arith.mulf %272, %273 : vector<14x32xf32>
    %275 = vector.broadcast %256 : vector<1x32xf32> to vector<14x32xf32>
    %276 = arith.addf %274, %275 : vector<14x32xf32>
    %277 = arith.truncf %276 : vector<14x32xf32> to vector<14x32xbf16>
    %c1_115 = arith.constant 1 : index
    %c0_116 = arith.constant 0 : index
    %c0_117 = arith.constant 0 : index
    %278 = vector.load %arg10[%c1_115, %c0_116, %c0_117] : memref<2x32x64xbf16, #tpu.memory_space<vmem>>, vector<1x32x64xbf16>
    %279 = vector.shape_cast %278 : vector<1x32x64xbf16> to vector<32x64xbf16>
    %cst_118 = arith.constant dense<0.000000e+00> : vector<14x64xf32>
    %280 = tpu.matmul %277, %279, %cst_118 {dimension_numbers = #tpu.dot_dimension_numbers<[1], [0], [0], [1], [0, 0, 1, 1], [], []>} : vector<14x32xbf16>, vector<32x64xbf16>, vector<14x64xf32> -> vector<14x64xf32>
    %c1_119 = arith.constant 1 : index
    %c0_120 = arith.constant 0 : index
    %c0_121 = arith.constant 0 : index
    %281 = vector.load %arg11[%c1_119, %c0_120, %c0_121] : memref<2x1x64xf32, #tpu.memory_space<vmem>>, vector<1x1x64xf32>
    %282 = vector.shape_cast %281 : vector<1x1x64xf32> to vector<1x64xf32>
    %283 = vector.broadcast %282 : vector<1x64xf32> to vector<14x64xf32>
    %284 = arith.addf %280, %283 : vector<14x64xf32>
    %cst_122 = arith.constant 0.000000e+00 : f32
    %285 = vector.broadcast %cst_122 : f32 to vector<14x64xf32>
    %286 = arith.maximumf %284, %285 : vector<14x64xf32>
    %287 = arith.truncf %286 : vector<14x64xf32> to vector<14x64xbf16>
    %c1_123 = arith.constant 1 : index
    %c0_124 = arith.constant 0 : index
    %c0_125 = arith.constant 0 : index
    %288 = vector.load %arg12[%c1_123, %c0_124, %c0_125] : memref<2x64x32xbf16, #tpu.memory_space<vmem>>, vector<1x64x32xbf16>
    %289 = vector.shape_cast %288 : vector<1x64x32xbf16> to vector<64x32xbf16>
    %cst_126 = arith.constant dense<0.000000e+00> : vector<14x32xf32>
    %290 = tpu.matmul %287, %289, %cst_126 {dimension_numbers = #tpu.dot_dimension_numbers<[1], [0], [0], [1], [0, 0, 1, 1], [], []>} : vector<14x64xbf16>, vector<64x32xbf16>, vector<14x32xf32> -> vector<14x32xf32>
    %c1_127 = arith.constant 1 : index
    %c0_128 = arith.constant 0 : index
    %c0_129 = arith.constant 0 : index
    %291 = vector.load %arg13[%c1_127, %c0_128, %c0_129] : memref<2x1x32xf32, #tpu.memory_space<vmem>>, vector<1x1x32xf32>
    %292 = vector.shape_cast %291 : vector<1x1x32xf32> to vector<1x32xf32>
    %293 = vector.broadcast %292 : vector<1x32xf32> to vector<14x32xf32>
    %294 = arith.addf %290, %293 : vector<14x32xf32>
    %295 = arith.addf %276, %294 : vector<14x32xf32>
    %c1_130 = arith.constant 1 : index
    %c0_131 = arith.constant 0 : index
    %c0_132 = arith.constant 0 : index
    %296 = vector.load %arg14[%c1_130, %c0_131, %c0_132] : memref<2x1x32xf32, #tpu.memory_space<vmem>>, vector<1x1x32xf32>
    %297 = vector.shape_cast %296 : vector<1x1x32xf32> to vector<1x32xf32>
    %c1_133 = arith.constant 1 : index
    %c0_134 = arith.constant 0 : index
    %c0_135 = arith.constant 0 : index
    %298 = vector.load %arg15[%c1_133, %c0_134, %c0_135] : memref<2x1x32xf32, #tpu.memory_space<vmem>>, vector<1x1x32xf32>
    %299 = vector.shape_cast %298 : vector<1x1x32xf32> to vector<1x32xf32>
    %cst_136 = arith.constant dense<0.000000e+00> : vector<14xf32>
    %300 = vector.multi_reduction <add>, %295, %cst_136 [1] : vector<14x32xf32> to vector<14xf32>
    %301 = vector.shape_cast %300 : vector<14xf32> to vector<14x1xf32>
    %cst_137 = arith.constant 3.200000e+01 : f32
    %302 = vector.broadcast %cst_137 : f32 to vector<14x1xf32>
    %303 = arith.divf %301, %302 : vector<14x1xf32>
    %304 = vector.broadcast %303 : vector<14x1xf32> to vector<14x32xf32>
    %305 = arith.subf %295, %304 : vector<14x32xf32>
    %306 = arith.mulf %305, %305 : vector<14x32xf32>
    %cst_138 = arith.constant dense<0.000000e+00> : vector<14xf32>
    %307 = vector.multi_reduction <add>, %306, %cst_138 [1] : vector<14x32xf32> to vector<14xf32>
    %308 = vector.shape_cast %307 : vector<14xf32> to vector<14x1xf32>
    %cst_139 = arith.constant 3.200000e+01 : f32
    %309 = vector.broadcast %cst_139 : f32 to vector<14x1xf32>
    %310 = arith.divf %308, %309 : vector<14x1xf32>
    %cst_140 = arith.constant 9.99999997E-7 : f32
    %311 = vector.broadcast %cst_140 : f32 to vector<14x1xf32>
    %312 = arith.addf %310, %311 : vector<14x1xf32>
    %313 = math.rsqrt %312 : vector<14x1xf32>
    %314 = vector.broadcast %313 : vector<14x1xf32> to vector<14x32xf32>
    %315 = arith.mulf %305, %314 : vector<14x32xf32>
    %316 = vector.broadcast %297 : vector<1x32xf32> to vector<14x32xf32>
    %317 = arith.mulf %315, %316 : vector<14x32xf32>
    %318 = vector.broadcast %299 : vector<1x32xf32> to vector<14x32xf32>
    %319 = arith.addf %317, %318 : vector<14x32xf32>
    %c0_141 = arith.constant 0 : index
    %c0_142 = arith.constant 0 : index
    %c0_143 = arith.constant 0 : index
    %320 = vector.load %arg16[%c0_141, %c0_142, %c0_143] : memref<1x14x32xf32, #tpu.memory_space<vmem>>, vector<1x14x32xf32>
    %321 = vector.shape_cast %320 : vector<1x14x32xf32> to vector<14x32xf32>
    %322 = vector.shape_cast %319 : vector<14x32xf32> to vector<1x14x32xf32>
    tpu.vector_store %arg16[%c0_141, %c0_142, %c0_143], %322 {strides = array<i32>} : memref<1x14x32xf32, #tpu.memory_space<vmem>>, vector<1x14x32xf32>,
    return
  }
  func.func @transform_0(%arg0: i32) -> (i32, i32, i32) {
    %c0_i32 = arith.constant 0 : i32
    %c0_i32_0 = arith.constant 0 : i32
    %c0_i32_1 = arith.constant 0 : i32
    return %arg0, %c0_i32, %c0_i32_0 : i32, i32, i32
  }
  func.func @transform_1(%arg0: i32) -> (i32, i32) {
    %c0_i32 = arith.constant 0 : i32
    %c0_i32_0 = arith.constant 0 : i32
    %c0_i32_1 = arith.constant 0 : i32
    return %c0_i32, %c0_i32_0 : i32, i32
  }
  func.func @transform_2(%arg0: i32) -> (i32, i32) {
    %c0_i32 = arith.constant 0 : i32
    %c0_i32_0 = arith.constant 0 : i32
    %c0_i32_1 = arith.constant 0 : i32
    return %c0_i32, %c0_i32_0 : i32, i32
  }
  func.func @transform_3(%arg0: i32) -> (i32, i32, i32) {
    %c0_i32 = arith.constant 0 : i32
    %c0_i32_0 = arith.constant 0 : i32
    %c0_i32_1 = arith.constant 0 : i32
    %c0_i32_2 = arith.constant 0 : i32
    return %c0_i32, %c0_i32_0, %c0_i32_1 : i32, i32, i32
  }
  func.func @transform_4(%arg0: i32) -> (i32, i32, i32) {
    %c0_i32 = arith.constant 0 : i32
    %c0_i32_0 = arith.constant 0 : i32
    %c0_i32_1 = arith.constant 0 : i32
    %c0_i32_2 = arith.constant 0 : i32
    return %c0_i32, %c0_i32_0, %c0_i32_1 : i32, i32, i32
  }
  func.func @transform_5(%arg0: i32) -> (i32, i32, i32) {
    %c0_i32 = arith.constant 0 : i32
    %c0_i32_0 = arith.constant 0 : i32
    %c0_i32_1 = arith.constant 0 : i32
    %c0_i32_2 = arith.constant 0 : i32
    return %c0_i32, %c0_i32_0, %c0_i32_1 : i32, i32, i32
  }
  func.func @transform_6(%arg0: i32) -> (i32, i32, i32) {
    %c0_i32 = arith.constant 0 : i32
    %c0_i32_0 = arith.constant 0 : i32
    %c0_i32_1 = arith.constant 0 : i32
    %c0_i32_2 = arith.constant 0 : i32
    return %c0_i32, %c0_i32_0, %c0_i32_1 : i32, i32, i32
  }
  func.func @transform_7(%arg0: i32) -> (i32, i32, i32) {
    %c0_i32 = arith.constant 0 : i32
    %c0_i32_0 = arith.constant 0 : i32
    %c0_i32_1 = arith.constant 0 : i32
    %c0_i32_2 = arith.constant 0 : i32
    return %c0_i32, %c0_i32_0, %c0_i32_1 : i32, i32, i32
  }
  func.func @transform_8(%arg0: i32) -> (i32, i32, i32) {
    %c0_i32 = arith.constant 0 : i32
    %c0_i32_0 = arith.constant 0 : i32
    %c0_i32_1 = arith.constant 0 : i32
    %c0_i32_2 = arith.constant 0 : i32
    return %c0_i32, %c0_i32_0, %c0_i32_1 : i32, i32, i32
  }
  func.func @transform_9(%arg0: i32) -> (i32, i32, i32) {
    %c0_i32 = arith.constant 0 : i32
    %c0_i32_0 = arith.constant 0 : i32
    %c0_i32_1 = arith.constant 0 : i32
    %c0_i32_2 = arith.constant 0 : i32
    return %c0_i32, %c0_i32_0, %c0_i32_1 : i32, i32, i32
  }
  func.func @transform_10(%arg0: i32) -> (i32, i32, i32) {
    %c0_i32 = arith.constant 0 : i32
    %c0_i32_0 = arith.constant 0 : i32
    %c0_i32_1 = arith.constant 0 : i32
    %c0_i32_2 = arith.constant 0 : i32
    return %c0_i32, %c0_i32_0, %c0_i32_1 : i32, i32, i32
  }
  func.func @transform_11(%arg0: i32) -> (i32, i32, i32) {
    %c0_i32 = arith.constant 0 : i32
    %c0_i32_0 = arith.constant 0 : i32
    %c0_i32_1 = arith.constant 0 : i32
    %c0_i32_2 = arith.constant 0 : i32
    return %c0_i32, %c0_i32_0, %c0_i32_1 : i32, i32, i32
  }
  func.func @transform_12(%arg0: i32) -> (i32, i32, i32) {
    %c0_i32 = arith.constant 0 : i32
    %c0_i32_0 = arith.constant 0 : i32
    %c0_i32_1 = arith.constant 0 : i32
    %c0_i32_2 = arith.constant 0 : i32
    return %c0_i32, %c0_i32_0, %c0_i32_1 : i32, i32, i32
  }
  func.func @transform_13(%arg0: i32) -> (i32, i32, i32) {
    %c0_i32 = arith.constant 0 : i32
    %c0_i32_0 = arith.constant 0 : i32
    %c0_i32_1 = arith.constant 0 : i32
    %c0_i32_2 = arith.constant 0 : i32
    return %c0_i32, %c0_i32_0, %c0_i32_1 : i32, i32, i32
  }
  func.func @transform_14(%arg0: i32) -> (i32, i32, i32) {
    %c0_i32 = arith.constant 0 : i32
    %c0_i32_0 = arith.constant 0 : i32
    %c0_i32_1 = arith.constant 0 : i32
    %c0_i32_2 = arith.constant 0 : i32
    return %c0_i32, %c0_i32_0, %c0_i32_1 : i32, i32, i32
  }
  func.func @transform_15(%arg0: i32) -> (i32, i32, i32) {
    %c0_i32 = arith.constant 0 : i32
    %c0_i32_0 = arith.constant 0 : i32
    %c0_i32_1 = arith.constant 0 : i32
    return %arg0, %c0_i32, %c0_i32_0 : i32, i32, i32
  }
}

</mosaic_0001>

<bundles_post_ra>
// kernel: encoder_forward.1
= control target key start
LH: loop header
LB: loop body
LE: loop exit
PB: predicated region body
PF: predicated region fallthrough
CT: control target
= control target key end

     0   :  { %s3065_s18 = smov 0   ;;  %s3488_s0 = inlined_call_operand.vmem [shape: bf16[2,14,24], index: 0, kind: input, shape index: {}]   ;;  %s3489_s1 = inlined_call_operand.vmem [shape: bf16[24,32], index: 1, kind: input, shape index: {}]   ;;  %s3490_s2 = inlined_call_operand.vmem [shape: f32[14,32], index: 2, kind: input, shape index: {}]   ;;  %s3491_s3 = inlined_call_operand.vmem [shape: bf16[2,32,96], index: 3, kind: input, shape index: {}]   ;;  %s3492_s4 = inlined_call_operand.vmem [shape: f32[2,1,96], index: 4, kind: input, shape index: {}]   ;;  %s3493_s5 = inlined_call_operand.vmem [shape: bf16[2,32,32], index: 5, kind: input, shape index: {}]   ;;  %s3494_s6 = inlined_call_operand.vmem [shape: f32[2,1,32], index: 6, kind: input, shape index: {}]   ;;  %s3495_s7 = inlined_call_operand.vmem [shape: f32[2,1,32], index: 7, kind: input, shape index: {}]   ;;  %s3496_s8 = inlined_call_operand.vmem [shape: f32[2,1,32], index: 8, kind: input, shape index: {}]   ;;  %s3497_s9 = inlined_call_operand.vmem [shape: bf16[2,32,64], index: 9, kind: input, shape index: {}]   ;;  %s3498_s10 = inlined_call_operand.vmem [shape: f32[2,1,64], index: 10, kind: input, shape index: {}]   ;;  %s3499_s11 = inlined_call_operand.vmem [shape: bf16[2,64,32], index: 11, kind: input, shape index: {}]   ;;  %s3500_s12 = inlined_call_operand.vmem [shape: f32[2,1,32], index: 12, kind: input, shape index: {}]   ;;  %s3501_s13 = inlined_call_operand.vmem [shape: f32[2,1,32], index: 13, kind: input, shape index: {}]   ;;  %s3502_s14 = inlined_call_operand.vmem [shape: f32[2,1,32], index: 14, kind: input, shape index: {}]   ;;  %s3503_s15 = inlined_call_operand.vmem [shape: f32[2,14,32], index: 15, kind: output, shape index: {}]  }
   0x1 LB: > { %s2460_s19 = sadd.s32 4294967295, %s2967_s18   ;;  %p2464_p0 = scmp.ge.s32.totalorder %s2967_s18, 1  ;;  %s2967_s18 = sphi %s3065_s18, %s25_s18  }
   0x2   : > { %p437_p1 = scmp.lt.s32.totalorder %s2967_s18, 3 }
   0x4   : > { %p438_p2 = pnand %p2464_p0, %p437_p1 }
   0x5   : > { %p485_p3 = scmp.lt.s32.totalorder (!%p438_p2), %s2460_s19, 1  ;;  %s2971_s25 = smov (!%p438_p2), 96  }
   0x6   : > { %441 = sbr.rel (%p438_p2) target bundleno = 4811 (0x12cb), region = 80  ;;  %s2972_s26 = smov (!%p438_p2), 120  }
   0x7   : > { %s2974_s28 = smov (!%p438_p2), 80   ;;  %s2975_s29 = smov (!%p438_p2), 112  }
   0x8   : > { %s3511_s30 = smov (!%p438_p2), 72   ;;  %s2977_s16 = smov (!%p438_p2), 104  }
   0x9   : > { %s3510_s17 = smov (!%p438_p2), 56   ;;  %s3509_s20 = smov (!%p438_p2), 64  }
   0xa   : > { %s3506_s21 = smov (!%p438_p2), 48   ;;  %s3504_s22 = smov (!%p438_p2), 40  }
   0xb   : > { %v2858_v0 = vld [vmem:[%s3489_s1 + $0x8] ss:$0 sps:$4 sm:$0xff]   ;;  %vm521_vm0 = vcmask 1043456   ;;  %v2969_v1 = vmov 0.0   ;;  %v2859_v3 = vld [vmem:[%s3489_s1] sm:$0xff]   ;;  %vm2970_vm1 = vmmov 0  }
   0xc   : > { %2628 = vmatprep.subr.bf16.mxu0 %v2969_v1  ;;  %2636 = vmatprep.subr.bf16.mxu1 %v2969_v1  ;;  %v523_v2 = vsel %vm521_vm0, %v2858_v0, 0  ;;  %s3521_s19 = smov (!%p485_p3, %s2460_s19), 1  ;;  %vm517_vm2 = vcmask 195584   ;;  %v2861_v5 = vld [vmem:[%s3491_s3 + $0x8] sm:$0xff]   ;;  %v2862_v6 = vld [vmem:[%s3491_s3] sm:$0xff]   ;;  %vm590_vm3 = vcmask 261120  }
   0xd   : > { %2632 = vmatprep.mubr.msk.bf16.mxu0 %vm2970_vm1, %v2969_v1  ;;  %2640 = vmatprep.mubr.msk.bf16.mxu1 %vm2970_vm1, %v2969_v1  ;;  %s2563_s24 = sshll.u32 %s3521_s19, 3  ;;  %v501_v8 = vld [vmem:[%s3490_s2] sm:$0xff]  ;;  %v502_v10 = vld [vmem:[%s3490_s2 + $0x8] sm:$0x3f]  ;;  %vm642_vm4 = vcmask 64512   ;;  %vm690_vm5 = vcmask 113664  }
   0xe   : > { %2629 = vmatpush3.bf16.msra.mxu0 %v523_v2  ;;  %s489_s27 = scalar_lea.vmem %s3488_s0, %s2563_s24  ;;  %2637 = vmatpush3.bf16.msra.mxu1 %v2861_v5  ;;  %v2473_v16 = vld [vmem:[%s3492_s4] ss:$0 sm:$0xff]  ;;  %vm694_vm6 = vcmask 111616   ;;  %vm716_vm7 = vcmask 1046528   ;;  %s3505_s23 = smov 8   ;;  %vm1161_vm8 = vcmask 130048  }
   0xf   : > { %2630 = vmatprep.subr.bf16.mxu0 %v2969_v1  ;;  %v2860_v4 = vld [vmem:[%s489_s27] sm:$0x7f]   ;;  %2638 = vmatprep.subr.bf16.mxu1 %v2969_v1  ;;  %s2973_s27 = smov 88   ;;  %s3507_s24 = smov 24   ;;  %vm1241_vm9 = vcmask 259072   ;;  %vm1392_vm10 = vcmask 523264  }
  0x12   : > { %2631 = vmatpush3.bf16.msra.mxu0 %v2859_v3  ;;  %2639 = vmatpush3.bf16.msra.mxu1 %v2862_v6 }
  0x13   : > { %2644 = vmatprep.subr.bf16.mxu0 %v2969_v1  ;;  %2650 = vmatprep.subr.bf16.mxu1 %v2969_v1 }
  0x15   : > { %2633 = vmatmul.mubr.msk.bf16.vlgmr.msra.gmra.mxu0 %vm517_vm2, %v2860_v4 }
  0x16   : > { %2646 = vmatprep.mubr.msk.bf16.mxu0 %vm2970_vm1, %v2969_v1 }
  0xd5   : > { %v559_v7 = vpop.f32.mrf.mxu0 }
  0xd6   : > { %v3110_v12 = vadd.f32 %v559_v7, %v501_v8 }
  0xd7   : > { %v2634_v9 = vpop.f32.mrf.mxu0 }
  0xd9   : > { %v562_v11 = vpop.f32.mrf.mxu0 }
  0xda   : > { %v3112_v13 = vadd.f32 %v562_v11, %v502_v10 }
  0xdb   : > { %v2635_v14 = vpop.f32.mrf.mxu0 }
  0xdc   : > { %v566_v15 = vpack.c.bf16 %v3112_v13, %v3110_v12 }
  0xde   : > { %2641 = vmatmul.mubr.msk.bf16.vlgmr.msra.gmra.mxu1 %vm590_vm3, %v566_v15 }
  0xdf   : > { %2652 = vmatprep.mubr.msk.bf16.mxu1 %vm2970_vm1, %v2969_v1 }
 0x19e   : > { %v628_v17 = vpop.f32.mrf.mxu1 }
 0x19f   : > { %v629_v19 = vadd.f32 %v2473_v16, %v628_v17 }
 0x1a0   : > { %v2642_v18 = vpop.f32.mrf.mxu1 }
 0x1a1   : > { %v635_v23 = vmul.f32 0.35355338, %v629_v19 }
 0x1a2   : > { %v631_v20 = vpop.f32.mrf.mxu1 }
 0x1a3   : > { %v632_v21 = vadd.f32 %v2473_v16, %v631_v20 }
 0x1a4   : > { %v2643_v22 = vpop.f32.mrf.mxu1 }
 0x1a5   : > { %v636_v24 = vmul.f32 0.35355338, %v632_v21  ;;  %v3122_v25 = vpack.c.bf16 %v632_v21, %v629_v19 }
 0x1a7   : > { %v637_v26 = vpack.c.bf16 %v636_v24, %v635_v23  ;;  %640 = vrot.lane.b32.xlu0 %v3122_v25, %s2971_s25 }
 0x1a9   : > { %766 = vrot.lane.b32.xlu1 %v637_v26, %s2972_s26 }
 0x1ab   : > { %768 = vrot.lane.b32.xlu0 %v3122_v25, %s2973_s27 }
 0x1ad   : > { %891 = vrot.lane.b32.xlu1 %v3122_v25, %s2974_s28 }
 0x1af   : > { %889 = vrot.lane.b32.xlu0 %v637_v26, %s2975_s29 }
 0x1b1   : > { %1014 = vrot.lane.b32.xlu1 %v3122_v25, %s3511_s30  ;;  %s3518_s30 = smov 16  }
 0x1b3   : > { %1012 = vrot.lane.b32.xlu0 %v637_v26, %s2977_s16 }
 0x219   : > { %v641_v27 = vpop.permute.xlu0 %640 }
 0x21a   : > { %v647_v28 = vsel %vm642_vm4, %v641_v27, 0 }
 0x21b   : > { %2645 = vmatpush3.bf16.xpose.msra.mxu0 %v647_v28  ;;  %v767_v30 = vpop.permute.xlu1 %766 }
 0x21c   : > { %2656 = vmatprep.subr.bf16.mxu0 %v2969_v1 }
 0x21d   : > { %v769_v29 = vpop.permute.xlu0 %768 }
 0x21e   : > { %v774_v31 = vsel %vm642_vm4, %v769_v29, 0 }
 0x21f   : > { %v892_v32 = vpop.permute.xlu1 %891 }
 0x220   : > { %v897_v33 = vsel %vm642_vm4, %v892_v32, 0 }
 0x221   : > { %v890_v35 = vpop.permute.xlu0 %889 }
 0x222   : > { %2647 = vmatmul.mubr.msk.bf16.vlgmr.msra.gmra.mxu0 %vm642_vm4, %v637_v26 }
 0x223   : > { %2657 = vmatpush3.bf16.xpose.msra.mxu0 %v774_v31  ;;  %2658 = vmatprep.mubr.msk.bf16.mxu0 %vm2970_vm1, %v2969_v1  ;;  %v1015_v34 = vpop.permute.xlu1 %1014 }
 0x224   : > { %2668 = vmatprep.subr.bf16.mxu0 %v2969_v1  ;;  %v1020_v36 = vsel %vm642_vm4, %v1015_v34, 0 }
 0x225   : > { %v1013_v37 = vpop.permute.xlu0 %1012 }
 0x22a   : > { %2659 = vmatmul.mubr.msk.bf16.vlgmr.msra.gmra.mxu0 %vm642_vm4, %v767_v30 }
 0x22b   : > { %2669 = vmatpush3.bf16.xpose.msra.mxu0 %v897_v33  ;;  %2670 = vmatprep.mubr.msk.bf16.mxu0 %vm2970_vm1, %v2969_v1 }
 0x22c   : > { %2680 = vmatprep.subr.bf16.mxu0 %v2969_v1 }
 0x232   : > { %2671 = vmatmul.mubr.msk.bf16.vlgmr.msra.gmra.mxu0 %vm642_vm4, %v890_v35 }
 0x233   : > { %2681 = vmatpush3.bf16.xpose.msra.mxu0 %v1020_v36  ;;  %2682 = vmatprep.mubr.msk.bf16.mxu0 %vm2970_vm1, %v2969_v1 }
 0x234   : > { %2692 = vmatprep.subr.bf16.mxu0 %v2969_v1 }
 0x23a   : > { %2683 = vmatmul.mubr.msk.bf16.vlgmr.msra.gmra.mxu0 %vm642_vm4, %v1013_v37 }
 0x23b   : > { %2696 = vmatprep.mubr.msk.bf16.mxu0 %vm2970_vm1, %v2969_v1 }
 0x2e2   : > { %v683_v38 = vpop.f32.mrf.mxu0 }
 0x2e3   : > { %v691_v39 = vsel %vm690_vm5, %v683_v38, -inf }
 0x2e4   : > { %692 = vmax.xlane.f32.xlu1 %v691_v39  ;;  %v2648_v40 = vpop.f32.mrf.mxu0 }
 0x2e6   : > { %v686_v41 = vpop.f32.mrf.mxu0 }
 0x2e7   : > { %v695_v42 = vsel %vm694_vm6, %v686_v41, -inf }
 0x2e8   : > { %696 = vmax.xlane.f32.xlu0 %v695_v42  ;;  %v2649_v43 = vpop.f32.mrf.mxu0 }
 0x2ea   : > { %v810_v44 = vpop.f32.mrf.mxu0 }
 0x2eb   : > { %v817_v45 = vsel %vm690_vm5, %v810_v44, -inf }
 0x2ec   : > { %818 = vmax.xlane.f32.xlu0 %v817_v45  ;;  %v2660_v46 = vpop.f32.mrf.mxu0 }
 0x2ee   : > { %v813_v47 = vpop.f32.mrf.mxu0 }
 0x2ef   : > { %v820_v48 = vsel %vm694_vm6, %v813_v47, -inf }
 0x2f0   : > { %821 = vmax.xlane.f32.xlu1 %v820_v48  ;;  %v2661_v49 = vpop.f32.mrf.mxu0 }
 0x2f2   : > { %v933_v50 = vpop.f32.mrf.mxu0 }
 0x2f3   : > { %v940_v51 = vsel %vm690_vm5, %v933_v50, -inf }
 0x2f4   : > { %941 = vmax.xlane.f32.xlu0 %v940_v51  ;;  %v2672_v52 = vpop.f32.mrf.mxu0 }
 0x2f6   : > { %v3160_v53 = vpop.f32.mrf.mxu0 }
 0x2f7   : > { %v943_v59 = vsel %vm694_vm6, %v3160_v53, -inf }
 0x2f8   : > { %v2673_v54 = vpop.f32.mrf.mxu0 }
 0x2fa   : > { %v3162_v55 = vpop.f32.mrf.mxu0 }
 0x2fb   : > { %v1063_v60 = vsel %vm690_vm5, %v3162_v55, -inf }
 0x2fc   : > { %v2684_v56 = vpop.f32.mrf.mxu0 }
 0x2fe   : > { %v3164_v57 = vpop.f32.mrf.mxu0 }
 0x2ff   : > { %v1066_v61 = vsel %vm694_vm6, %v3164_v57, -inf }
 0x300   : > { %v2685_v58 = vpop.f32.mrf.mxu0 }
 0x301   : > { %836 = vrot.lane.b32.xlu1 %v3122_v25, %s3510_s17 }
 0x30a   : > { %711 = vrot.lane.b32.xlu0 %v3122_v25, %s3509_s20  ;;  %s3512_s20 = smov 72  }
 0x325   : > { %944 = vmax.xlane.f32.xlu1 %v943_v59 }
 0x329   : > { %1064 = vmax.xlane.f32.xlu0 %v1063_v60  ;;  %1067 = vmax.xlane.f32.xlu1 %v1066_v61 }
 0x33a   : > { %959 = vrot.lane.b32.xlu1 %v3122_v25, %s3506_s21 }
 0x33f   : > { %1082 = vrot.lane.b32.xlu0 %v3122_v25, %s3504_s22  ;;  %s3508_s22 = smov 16  }
 0x36d   : > { %v693_v62 = vpop.xlane.xlu1 %692 }
 0x36e   : > { %v698_v63 = vsub.f32 %v683_v38, %v693_v62 }
 0x370   : > { %v700_v0 = vmul.f32 1.442695, %v698_v63 }
 0x371   : > { %v697_v2 = vpop.xlane.xlu0 %696 }
 0x372   : > { %v699_v3 = vsub.f32 %v686_v41, %v697_v2  ;;  %2881 = vpow2.f32 %v700_v0 }
 0x374   : > { %v702_v4 = vmul.f32 1.442695, %v699_v3 }
 0x375   : > { %v819_v5 = vpop.xlane.xlu0 %818 }
 0x376   : > { %2883 = vpow2.f32 %v702_v4  ;;  %v823_v6 = vsub.f32 %v810_v44, %v819_v5 }
 0x378   : > { %v825_v7 = vmul.f32 1.442695, %v823_v6 }
 0x379   : > { %v822_v8 = vpop.xlane.xlu1 %821 }
 0x37a   : > { %2885 = vpow2.f32 %v825_v7  ;;  %v824_v9 = vsub.f32 %v813_v47, %v822_v8 }
 0x37c   : > { %v827_v10 = vmul.f32 1.442695, %v824_v9  ;;  %v2863_v9 = vld [vmem:[%s3493_s5 + $0x8] sm:$0xff]  }
 0x37d   : > { %v942_v11 = vpop.xlane.xlu0 %941  ;;  %v837_v20 = vpop.permute.xlu1 %836  ;;  %2693 = vmatpush3.bf16.msra.mxu0 %v2863_v9 }
 0x37e   : > { %2887 = vpow2.f32 %v827_v10  ;;  %v946_v14 = vsub.f32 %v933_v50, %v942_v11  ;;  %v842_v22 = vsel %vm716_vm7, %v837_v20, 0  ;;  %2694 = vmatprep.subr.bf16.mxu0 %v2969_v1 }
 0x37f   : > { %v2882_v17 = vpop.eup %2881 }
 0x380   : > { %v948_v15 = vmul.f32 1.442695, %v946_v14  ;;  %v704_v50 = vsel %vm690_vm5, %v2882_v17, 0.0 }
 0x381   : > { %v712_v16 = vpop.permute.xlu0 %711 }
 0x382   : > { %2889 = vpow2.f32 %v948_v15  ;;  %v718_v18 = vsel %vm716_vm7, %v712_v16, 0 }
 0x383   : > { %v2884_v19 = vpop.eup %2883  ;;  %2651 = vmatpush3.bf16.msra.mxu1 %v718_v18 }
 0x384   : > { %v710_v21 = vpack.c.bf16 %v2884_v19, %v2882_v17  ;;  %2662 = vmatprep.subr.bf16.mxu1 %v2969_v1  ;;  %v707_v52 = vsel %vm694_vm6, %v2884_v19, 0.0  ;;  %v2864_v19 = vld [vmem:[%s3493_s5] sm:$0xff]  }
 0x385   : > { %2695 = vmatpush3.bf16.msra.mxu0 %v2864_v19 }
 0x386   : > { %2653 = vmatmul.mubr.msk.bf16.vlgmr.msra.gmra.mxu1 %vm690_vm5, %v710_v21  ;;  %2708 = vmatprep.subr.bf16.mxu0 %v2969_v1 }
 0x387   : > { %v2886_v23 = vpop.eup %2885  ;;  %2663 = vmatpush3.bf16.msra.mxu1 %v842_v22  ;;  %2664 = vmatprep.mubr.msk.bf16.mxu1 %vm2970_vm1, %v2969_v1 }
 0x388   : > { %v829_v24 = vsel %vm690_vm5, %v2886_v23, 0.0  ;;  %2674 = vmatprep.subr.bf16.mxu1 %v2969_v1 }
 0x389   : > { %830 = vadd.xlane.f32.xlu1 %v829_v24 }
 0x38b   : > { %v2888_v25 = vpop.eup %2887 }
 0x38c   : > { %v832_v26 = vsel %vm694_vm6, %v2888_v25, 0.0  ;;  %v835_v27 = vpack.c.bf16 %v2888_v25, %v2886_v23 }
 0x38d   : > { %833 = vadd.xlane.f32.xlu0 %v832_v26 }
 0x38e   : > { %2665 = vmatmul.mubr.msk.bf16.vlgmr.msra.gmra.mxu1 %vm690_vm5, %v835_v27 }
 0x38f   : > { %v2890_v28 = vpop.eup %2889  ;;  %2676 = vmatprep.mubr.msk.bf16.mxu1 %vm2970_vm1, %v2969_v1 }
 0x390   : > { %v952_v29 = vsel %vm690_vm5, %v2890_v28, 0.0 }
 0x391   : > { %953 = vadd.xlane.f32.xlu0 %v952_v29 }
 0x3ae   : > { %v945_v30 = vpop.xlane.xlu1 %944 }
 0x3af   : > { %v947_v31 = vsub.f32 %v3160_v53, %v945_v30 }
 0x3b1   : > { %v950_v32 = vmul.f32 1.442695, %v947_v31 }
 0x3b2   : > { %v1065_v33 = vpop.xlane.xlu0 %1064  ;;  %v1068_v34 = vpop.xlane.xlu1 %1067 }
 0x3b3   : > { %2891 = vpow2.f32 %v950_v32  ;;  %v1069_v35 = vsub.f32 %v3162_v55, %v1065_v33  ;;  %v1070_v36 = vsub.f32 %v3164_v57, %v1068_v34 }
 0x3b5   : > { %v1071_v37 = vmul.f32 1.442695, %v1069_v35  ;;  %v1073_v38 = vmul.f32 1.442695, %v1070_v36 }
 0x3b6   : > { %v960_v39 = vpop.permute.xlu1 %959  ;;  %v1083_v42 = vpop.permute.xlu0 %1082 }
 0x3b7   : > { %2893 = vpow2.f32 %v1071_v37  ;;  %v965_v40 = vsel %vm716_vm7, %v960_v39, 0  ;;  %v1088_v45 = vsel %vm716_vm7, %v1083_v42, 0 }
 0x3b8   : > { %2895 = vpow2.f32 %v1073_v38  ;;  %2675 = vmatpush3.bf16.msra.mxu1 %v965_v40 }
 0x3b9   : > { %2686 = vmatprep.subr.bf16.mxu1 %v2969_v1 }
 0x3c0   : > { %v2892_v41 = vpop.eup %2891 }
 0x3c1   : > { %v955_v43 = vsel %vm694_vm6, %v2892_v41, 0.0  ;;  %v958_v44 = vpack.c.bf16 %v2892_v41, %v2890_v28 }
 0x3c2   : > { %956 = vadd.xlane.f32.xlu1 %v955_v43 }
 0x3c3   : > { %2677 = vmatmul.mubr.msk.bf16.vlgmr.msra.gmra.mxu1 %vm690_vm5, %v958_v44 }
 0x3c4   : > { %v2894_v46 = vpop.eup %2893  ;;  %2687 = vmatpush3.bf16.msra.mxu1 %v1088_v45  ;;  %2688 = vmatprep.mubr.msk.bf16.mxu1 %vm2970_vm1, %v2969_v1 }
 0x3c5   : > { %v2896_v47 = vpop.eup %2895  ;;  %v1075_v48 = vsel %vm690_vm5, %v2894_v46, 0.0  ;;  %2700 = vmatprep.subr.bf16.mxu1 %v2969_v1 }
 0x3c6   : > { %1076 = vadd.xlane.f32.xlu0 %v1075_v48  ;;  %v1078_v49 = vsel %vm694_vm6, %v2896_v47, 0.0  ;;  %v1081_v51 = vpack.c.bf16 %v2896_v47, %v2894_v46 }
 0x3c7   : > { %1079 = vadd.xlane.f32.xlu1 %v1078_v49 }
 0x3ca   : > { %705 = vadd.xlane.f32.xlu0 %v704_v50 }
 0x3cb   : > { %708 = vadd.xlane.f32.xlu1 %v707_v52  ;;  %2689 = vmatmul.mubr.msk.bf16.vlgmr.msra.gmra.mxu1 %vm690_vm5, %v1081_v51 }
 0x3cc   : > { %2704 = vmatprep.mubr.msk.bf16.mxu1 %vm2970_vm1, %v2969_v1 }
 0x412   : > { %v831_v53 = vpop.xlane.xlu1 %830 }
 0x413   : > { %2897 = vrcp.f32 %v831_v53  ;;  %v2485_v53 = vld [vmem:[%s3494_s6] ss:$0 sm:$0xff] }
 0x416   : > { %v834_v54 = vpop.xlane.xlu0 %833 }
 0x417   : > { %2899 = vrcp.f32 %v834_v54 }
 0x41a   : > { %v954_v5 = vpop.xlane.xlu0 %953 }
 0x41b   : > { %2901 = vrcp.f32 %v954_v5 }
 0x420   : > { %v2898_v61 = vpop.eup %2897 }
 0x424   : > { %v2900_v62 = vpop.eup %2899 }
 0x428   : > { %v2902_v14 = vpop.eup %2901 }
 0x446   : > { %v3211_v55 = vpop.f32.mrf.mxu1 }
 0x448   : > { %v2654_v56 = vpop.f32.mrf.mxu1 }
 0x44a   : > { %v757_v57 = vpop.f32.mrf.mxu1 }
 0x44b   : > { %v957_v6 = vpop.xlane.xlu1 %956 }
 0x44c   : > { %v2655_v58 = vpop.f32.mrf.mxu1  ;;  %2903 = vrcp.f32 %v957_v6 }
 0x44e   : > { %v878_v59 = vpop.f32.mrf.mxu1 }
 0x44f   : > { %v887_v0 = vmul.f32 %v2898_v61, %v878_v59  ;;  %v1077_v7 = vpop.xlane.xlu0 %1076 }
 0x450   : > { %v2666_v60 = vpop.f32.mrf.mxu1  ;;  %v1080_v8 = vpop.xlane.xlu1 %1079  ;;  %2905 = vrcp.f32 %v1077_v7 }
 0x451   : > { %2907 = vrcp.f32 %v1080_v8 }
 0x452   : > { %v881_v63 = vpop.f32.mrf.mxu1 }
 0x453   : > { %v888_v2 = vmul.f32 %v2900_v62, %v881_v63  ;;  %v706_v31 = vpop.xlane.xlu0 %705 }
 0x454   : > { %v2667_v3 = vpop.f32.mrf.mxu1  ;;  %v709_v32 = vpop.xlane.xlu1 %708  ;;  %2909 = vrcp.f32 %v706_v31  ;;  %v2868_v31 = vld [vmem:[%s3499_s11 + $0x10] sm:$0xff]  }
 0x455   : > { %v2828_v4 = vpack.i.bf16 %v888_v2, %v887_v0  ;;  %2911 = vrcp.f32 %v709_v32  ;;  %v2869_v32 = vld [vmem:[%s3499_s11 + $0x8] sm:$0xff]  }
 0x457   : > { %2829 = vrot.lane.b32.xlu0 %v2828_v4, %s3505_s23 }
 0x459   : > { %v2904_v15 = vpop.eup %2903 }
 0x45d   : > { %v2906_v24 = vpop.eup %2905 }
 0x45e   : > { %v2908_v25 = vpop.eup %2907 }
 0x461   : > { %v2910_v34 = vpop.eup %2909 }
 0x462   : > { %v2912_v36 = vpop.eup %2911  ;;  %v763_v41 = vmul.f32 %v2910_v34, %v3211_v55  ;;  %v2491_v34 = vld [vmem:[%s3498_s10] ss:$0 sm:$0xff] }
 0x463   : > { %v764_v42 = vmul.f32 %v2912_v36, %v757_v57 }
 0x483   : > { %v1001_v10 = vpop.f32.mrf.mxu1 }
 0x484   : > { %v1010_v17 = vmul.f32 %v2902_v14, %v1001_v10  ;;  %v2866_v10 = vld [vmem:[%s3497_s9] sm:$0xff]  }
 0x485   : > { %v2678_v11 = vpop.f32.mrf.mxu1 }
 0x486   : > { %v2867_v11 = vld [vmem:[%s3499_s11 + $0x18] sm:$0xff]  }
 0x487   : > { %v1004_v16 = vpop.f32.mrf.mxu1 }
 0x488   : > { %v1011_v18 = vmul.f32 %v2904_v15, %v1004_v16 }
 0x489   : > { %v2679_v20 = vpop.f32.mrf.mxu1 }
 0x48a   : > { %v2833_v21 = vpack.i.bf16 %v1011_v18, %v1010_v17 }
 0x48b   : > { %v1124_v22 = vpop.f32.mrf.mxu1 }
 0x48c   : > { %2834 = vrot.lane.b32.xlu1 %v2833_v21, %s3508_s22  ;;  %v1133_v27 = vmul.f32 %v2906_v24, %v1124_v22  ;;  %v2489_v22 = vld [vmem:[%s3495_s7] ss:$0 sm:$0xff] }
 0x48d   : > { %v2690_v23 = vpop.f32.mrf.mxu1 }
 0x48f   : > { %v1127_v26 = vpop.f32.mrf.mxu1 }
 0x490   : > { %v1134_v28 = vmul.f32 %v2908_v25, %v1127_v26  ;;  %v2490_v26 = vld [vmem:[%s3496_s8] ss:$0 sm:$0xff] }
 0x491   : > { %v2691_v29 = vpop.f32.mrf.mxu1 }
 0x492   : > { %v2838_v30 = vpack.i.bf16 %v1134_v28, %v1133_v27 }
 0x494   : > { %2839 = vrot.lane.b32.xlu1 %v2838_v30, %s3507_s24  ;;  %s3519_s24 = smov 24  }
 0x4c9   : > { %v2830_v33 = vpop.permute.xlu0 %2829 }
 0x4ca   : > { %v2832_v37 = vunpack.i.h.bf16 %v2830_v33  ;;  %v2831_v38 = vunpack.i.l.bf16 %v2830_v33  ;;  %v2870_v33 = vld [vmem:[%s3499_s11] sm:$0xff]  }
 0x4cc   : > { %v1159_v44 = vsel %vm642_vm4, %v763_v41, %v2831_v38  ;;  %v1160_v45 = vsel %vm642_vm4, %v764_v42, %v2832_v37 }
 0x4fe   : > { %v2835_v35 = vpop.permute.xlu1 %2834 }
 0x4ff   : > { %v2837_v39 = vunpack.i.h.bf16 %v2835_v35  ;;  %v2836_v40 = vunpack.i.l.bf16 %v2835_v35 }
 0x501   : > { %v1163_v48 = vsel %vm1161_vm8, %v1160_v45, %v2837_v39  ;;  %v1162_v49 = vsel %vm1161_vm8, %v1159_v44, %v2836_v40  ;;  %v2495_v44 = vld [vmem:[%s3500_s12] ss:$0 sm:$0xff] }
 0x506   : > { %v2840_v43 = vpop.permute.xlu1 %2839 }
 0x507   : > { %v2842_v46 = vunpack.i.h.bf16 %v2840_v43  ;;  %v2841_v47 = vunpack.i.l.bf16 %v2840_v43 }
 0x509   : > { %v1164_v50 = vsel %vm517_vm2, %v1162_v49, %v2841_v47  ;;  %v1165_v51 = vsel %vm517_vm2, %v1163_v48, %v2842_v46 }
 0x50a   : > { %v1166_v52 = vpack.c.bf16 %v1165_v51, %v1164_v50 }
 0x50c   : > { %2697 = vmatmul.mubr.msk.bf16.vlgmr.msra.gmra.mxu0 %vm590_vm3, %v1166_v52 }
 0x50d   : > { %2716 = vmatprep.mubr.msk.bf16.mxu0 %vm2970_vm1, %v2969_v1  ;;  %2709 = vmatpush3.bf16.msra.mxu0 %v2867_v11 }
 0x50e   : > { %2710 = vmatprep.subr.bf16.mxu0 %v2969_v1 }
 0x511   : > { %2711 = vmatpush3.bf16.msra.mxu0 %v2868_v31 }
 0x512   : > { %2712 = vmatprep.subr.bf16.mxu0 %v2969_v1 }
 0x515   : > { %2713 = vmatpush3.bf16.msra.mxu0 %v2869_v32 }
 0x516   : > { %2714 = vmatprep.subr.bf16.mxu0 %v2969_v1 }
 0x519   : > { %2715 = vmatpush3.bf16.msra.mxu0 %v2870_v33 }
 0x51a   : > { %2734 = vmatprep.subr.bf16.mxu0 %v2969_v1 }
 0x5cc   : > { %v1227_v54 = vpop.f32.mrf.mxu0 }
 0x5cd   : > { %v1228_v55 = vadd.f32 %v2485_v53, %v1227_v54 }
 0x5ce   : > { %v2698_v56 = vpop.f32.mrf.mxu0 }
 0x5cf   : > { %v1234_v57 = vadd.f32 %v1228_v55, %v3110_v12 }
 0x5d0   : > { %v1230_v58 = vpop.f32.mrf.mxu0 }
 0x5d1   : > { %v1231_v59 = vadd.f32 %v2485_v53, %v1230_v58  ;;  %v1238_v60 = vsel %vm590_vm3, %v1234_v57, 0.0 }
 0x5d2   : > { %1239 = vadd.xlane.f32.xlu0 %v1238_v60  ;;  %v2699_v61 = vpop.f32.mrf.mxu0 }
 0x5d3   : > { %v1235_v62 = vadd.f32 %v1231_v59, %v3112_v13  ;;  %v2865_v13 = vld [vmem:[%s3497_s9 + $0x8] sm:$0xff]  }
 0x5d4   : > { %2701 = vmatpush3.bf16.msra.mxu1 %v2865_v13 }
 0x5d5   : > { %v1242_v63 = vsel %vm1241_vm9, %v1235_v62, 0.0  ;;  %2702 = vmatprep.subr.bf16.mxu1 %v2969_v1 }
 0x5d6   : > { %1243 = vadd.xlane.f32.xlu1 %v1242_v63 }
 0x5d8   : > { %2703 = vmatpush3.bf16.msra.mxu1 %v2866_v10  ;;  %v2501_v10 = vld [vmem:[%s3501_s13] ss:$0 sm:$0xff] }
 0x5d9   : > { %2720 = vmatprep.subr.bf16.mxu1 %v2969_v1 }
 0x65b   : > { %v1240_v0 = vpop.xlane.xlu0 %1239 }
 0x65c   : > { %v1246_v2 = vmul.f32 0.03125, %v1240_v0 }
 0x65e   : > { %v1248_v3 = vsub.f32 %v1234_v57, %v1246_v2  ;;  %v2871_v2 = vld [vmem:[%s3491_s3 + $0x18] sm:$0xff]  }
 0x65f   : > { %v1244_v4 = vpop.xlane.xlu1 %1243 }
 0x660   : > { %v1247_v5 = vmul.f32 0.03125, %v1244_v4  ;;  %v1250_v6 = vmul.f32 %v1248_v3, %v1248_v3 }
 0x662   : > { %v1249_v7 = vsub.f32 %v1235_v62, %v1247_v5  ;;  %v1252_v12 = vsel %vm590_vm3, %v1250_v6, 0.0 }
 0x663   : > { %1253 = vadd.xlane.f32.xlu0 %v1252_v12 }
 0x664   : > { %v1251_v8 = vmul.f32 %v1249_v7, %v1249_v7 }
 0x666   : > { %v1255_v9 = vsel %vm1241_vm9, %v1251_v8, 0.0 }
 0x667   : > { %1256 = vadd.xlane.f32.xlu0 %v1255_v9 }
 0x6ec   : > { %v1254_v14 = vpop.xlane.xlu0 %1253 }
 0x6ed   : > { %v1258_v15 = vmul.f32 0.03125, %v1254_v14 }
 0x6ef   : > { %v1260_v16 = vadd.f32 1e-06, %v1258_v15 }
 0x6f0   : > { %v1257_v17 = vpop.xlane.xlu0 %1256 }
 0x6f1   : > { %2913 = vrsqrt.f32 %v1260_v16  ;;  %v1259_v18 = vmul.f32 0.03125, %v1257_v17  ;;  %v2502_v16 = vld [vmem:[%s3502_s14] ss:$0 sm:$0xff] }
 0x6f3   : > { %v1261_v19 = vadd.f32 1e-06, %v1259_v18 }
 0x6f5   : > { %2915 = vrsqrt.f32 %v1261_v19 }
 0x6fe   : > { %v2914_v20 = vpop.eup %2913 }
 0x6ff   : > { %v1264_v21 = vmul.f32 %v2914_v20, %v1248_v3  ;;  %v2872_v3 = vld [vmem:[%s3491_s3 + $0x10] sm:$0xff]  }
 0x701   : > { %v1272_v25 = vmul.f32 %v2489_v22, %v1264_v21 }
 0x702   : > { %v2916_v23 = vpop.eup %2915 }
 0x703   : > { %v1265_v24 = vmul.f32 %v2916_v23, %v1249_v7  ;;  %v1280_v28 = vadd.f32 %v2490_v26, %v1272_v25 }
 0x705   : > { %v1273_v27 = vmul.f32 %v2489_v22, %v1265_v24  ;;  %v2508_v22 = vld [vmem:[%s3492_s4 + $0x1] ss:$0 sm:$0xff] }
 0x707   : > { %v1281_v29 = vadd.f32 %v2490_v26, %v1273_v27 }
 0x709   : > { %v1282_v30 = vpack.c.bf16 %v1281_v29, %v1280_v28 }
 0x70b   : > { %2705 = vmatmul.mubr.msk.bf16.vlgmr.msra.gmra.mxu1 %vm590_vm3, %v1282_v30 }
 0x70c   : > { %2724 = vmatprep.mubr.msk.bf16.mxu1 %vm2970_vm1, %v2969_v1  ;;  %2721 = vmatpush3.bf16.msra.mxu1 %v2871_v2 }
 0x70d   : > { %2722 = vmatprep.subr.bf16.mxu1 %v2969_v1 }
 0x710   : > { %2723 = vmatpush3.bf16.msra.mxu1 %v2872_v3 }
 0x711   : > { %2728 = vmatprep.subr.bf16.mxu1 %v2969_v1 }
 0x7cb   : > { %v1343_v35 = vpop.f32.mrf.mxu1 }
 0x7cc   : > { %v1344_v37 = vadd.f32 %v2491_v34, %v1343_v35 }
 0x7cd   : > { %v2706_v36 = vpop.f32.mrf.mxu1 }
 0x7ce   : > { %v1350_v41 = vmax.f32 %v1344_v37, 0.0 }
 0x7cf   : > { %v1346_v38 = vpop.f32.mrf.mxu1 }
 0x7d0   : > { %v1347_v39 = vadd.f32 %v2491_v34, %v1346_v38 }
 0x7d1   : > { %v2707_v40 = vpop.f32.mrf.mxu1 }
 0x7d2   : > { %v1351_v42 = vmax.f32 %v1347_v39, 0.0 }
 0x7d4   : > { %v1352_v43 = vpack.c.bf16 %v1351_v42, %v1350_v41 }
 0x7d6   : > { %2717 = vmatmul.mubr.msk.bf16.vlgmr.msra.gmra.mxu0 %vm1392_vm10, %v1352_v43 }
 0x7d7   : > { %2736 = vmatprep.mubr.msk.bf16.mxu0 %vm2970_vm1, %v2969_v1 }
 0x896   : > { %v1430_v45 = vpop.f32.mrf.mxu0 }
 0x897   : > { %v1431_v46 = vadd.f32 %v2495_v44, %v1430_v45 }
 0x898   : > { %v2718_v47 = vpop.f32.mrf.mxu0 }
 0x899   : > { %v1437_v48 = vadd.f32 %v1431_v46, %v1280_v28 }
 0x89a   : > { %v1433_v49 = vpop.f32.mrf.mxu0 }
 0x89b   : > { %v1434_v50 = vadd.f32 %v2495_v44, %v1433_v49  ;;  %v1441_v51 = vsel %vm590_vm3, %v1437_v48, 0.0 }
 0x89c   : > { %1442 = vadd.xlane.f32.xlu1 %v1441_v51  ;;  %v2719_v52 = vpop.f32.mrf.mxu0 }
 0x89d   : > { %v1438_v53 = vadd.f32 %v1434_v50, %v1281_v29 }
 0x89f   : > { %v1444_v54 = vsel %vm1241_vm9, %v1438_v53, 0.0 }
 0x8a0   : > { %1445 = vadd.xlane.f32.xlu0 %v1444_v54 }
 0x925   : > { %v1443_v55 = vpop.xlane.xlu1 %1442 }
 0x926   : > { %v1447_v56 = vmul.f32 0.03125, %v1443_v55 }
 0x928   : > { %v1449_v57 = vsub.f32 %v1437_v48, %v1447_v56 }
 0x929   : > { %v1446_v58 = vpop.xlane.xlu0 %1445 }
 0x92a   : > { %v1448_v59 = vmul.f32 0.03125, %v1446_v58  ;;  %v1451_v60 = vmul.f32 %v1449_v57, %v1449_v57 }
 0x92c   : > { %v1450_v61 = vsub.f32 %v1438_v53, %v1448_v59  ;;  %v1453_v62 = vsel %vm590_vm3, %v1451_v60, 0.0 }
 0x92d   : > { %1454 = vadd.xlane.f32.xlu1 %v1453_v62 }
 0x92e   : > { %v1452_v63 = vmul.f32 %v1450_v61, %v1450_v61 }
 0x930   : > { %v1456_v0 = vsel %vm1241_vm9, %v1452_v63, 0.0 }
 0x931   : > { %1457 = vadd.xlane.f32.xlu0 %v1456_v0 }
 0x9b6   : > { %v1455_v4 = vpop.xlane.xlu1 %1454 }
 0x9b7   : > { %v1459_v5 = vmul.f32 0.03125, %v1455_v4 }
 0x9b9   : > { %v1461_v6 = vadd.f32 1e-06, %v1459_v5 }
 0x9ba   : > { %v1458_v7 = vpop.xlane.xlu0 %1457 }
 0x9bb   : > { %2917 = vrsqrt.f32 %v1461_v6  ;;  %v1460_v12 = vmul.f32 0.03125, %v1458_v7 }
 0x9bd   : > { %v1462_v8 = vadd.f32 1e-06, %v1460_v12 }
 0x9bf   : > { %2919 = vrsqrt.f32 %v1462_v8 }
 0x9c8   : > { %v2918_v9 = vpop.eup %2917 }
 0x9c9   : > { %v1465_v13 = vmul.f32 %v2918_v9, %v1449_v57 }
 0x9cb   : > { %v1473_v15 = vmul.f32 %v2501_v10, %v1465_v13 }
 0x9cc   : > { %v2920_v11 = vpop.eup %2919 }
 0x9cd   : > { %v1466_v14 = vmul.f32 %v2920_v11, %v1450_v61  ;;  %v3303_v18 = vadd.f32 %v2502_v16, %v1473_v15 }
 0x9cf   : > { %v1474_v17 = vmul.f32 %v2501_v10, %v1466_v14 }
 0x9d1   : > { %v3305_v19 = vadd.f32 %v2502_v16, %v1474_v17 }
 0x9d3   : > { %v1483_v20 = vpack.c.bf16 %v3305_v19, %v3303_v18 }
 0x9d5   : > { %2725 = vmatmul.mubr.msk.bf16.vlgmr.msra.gmra.mxu1 %vm590_vm3, %v1483_v20 }
 0x9d6   : > { %2730 = vmatprep.mubr.msk.bf16.mxu1 %vm2970_vm1, %v2969_v1 }
 0xa95   : > { %v1546_v21 = vpop.f32.mrf.mxu1 }
 0xa96   : > { %v1547_v25 = vadd.f32 %v2508_v22, %v1546_v21 }
 0xa97   : > { %v2726_v23 = vpop.f32.mrf.mxu1 }
 0xa98   : > { %v1553_v30 = vmul.f32 0.35355338, %v1547_v25 }
 0xa99   : > { %v1549_v24 = vpop.f32.mrf.mxu1 }
 0xa9a   : > { %v1550_v26 = vadd.f32 %v2508_v22, %v1549_v24 }
 0xa9b   : > { %v2727_v27 = vpop.f32.mrf.mxu1 }
 0xa9c   : > { %v1554_v28 = vmul.f32 0.35355338, %v1550_v26  ;;  %v3315_v29 = vpack.c.bf16 %v1550_v26, %v1547_v25 }
 0xa9e   : > { %1682 = vrot.lane.b32.xlu0 %v3315_v29, %s2973_s27  ;;  %1558 = vrot.lane.b32.xlu1 %v3315_v29, %s2971_s25  ;;  %v1555_v31 = vpack.c.bf16 %v1554_v28, %v1553_v30  ;;  %s3513_s25 = smov 56   ;;  %s3515_s27 = smov 48  }
 0xaa2   : > { %1803 = vrot.lane.b32.xlu0 %v1555_v31, %s2975_s29  ;;  %1680 = vrot.lane.b32.xlu1 %v1555_v31, %s2972_s26  ;;  %s3514_s26 = smov 64   ;;  %s3517_s29 = smov 8  }
 0xaa6   : > { %1926 = vrot.lane.b32.xlu0 %v1555_v31, %s2977_s16  ;;  %1805 = vrot.lane.b32.xlu1 %v3315_v29, %s2974_s28  ;;  %s3516_s28 = smov 40  }
 0xaaa   : > { %1928 = vrot.lane.b32.xlu1 %v3315_v29, %s3512_s20 }
 0xb10   : > { %v1559_v32 = vpop.permute.xlu1 %1558  ;;  %v1683_v34 = vpop.permute.xlu0 %1682 }
 0xb11   : > { %v1564_v33 = vsel %vm642_vm4, %v1559_v32, 0  ;;  %v1688_v36 = vsel %vm642_vm4, %v1683_v34, 0 }
 0xb12   : > { %2729 = vmatpush3.bf16.xpose.msra.mxu1 %v1564_v33 }
 0xb13   : > { %2740 = vmatprep.subr.bf16.mxu1 %v2969_v1 }
 0xb14   : > { %v1681_v35 = vpop.permute.xlu1 %1680  ;;  %v1804_v40 = vpop.permute.xlu0 %1803 }
 0xb18   : > { %v1806_v37 = vpop.permute.xlu1 %1805  ;;  %v1927_v42 = vpop.permute.xlu0 %1926 }
 0xb19   : > { %2731 = vmatmul.mubr.msk.bf16.vlgmr.msra.gmra.mxu1 %vm642_vm4, %v1555_v31  ;;  %v1811_v38 = vsel %vm642_vm4, %v1806_v37, 0 }
 0xb1a   : > { %2741 = vmatpush3.bf16.xpose.msra.mxu1 %v1688_v36  ;;  %2742 = vmatprep.mubr.msk.bf16.mxu1 %vm2970_vm1, %v2969_v1 }
 0xb1b   : > { %2752 = vmatprep.subr.bf16.mxu1 %v2969_v1 }
 0xb1c   : > { %v1929_v39 = vpop.permute.xlu1 %1928 }
 0xb1d   : > { %v1934_v41 = vsel %vm642_vm4, %v1929_v39, 0 }
 0xb21   : > { %2743 = vmatmul.mubr.msk.bf16.vlgmr.msra.gmra.mxu1 %vm642_vm4, %v1681_v35 }
 0xb22   : > { %2753 = vmatpush3.bf16.xpose.msra.mxu1 %v1811_v38  ;;  %2754 = vmatprep.mubr.msk.bf16.mxu1 %vm2970_vm1, %v2969_v1 }
 0xb23   : > { %2764 = vmatprep.subr.bf16.mxu1 %v2969_v1 }
 0xb29   : > { %2755 = vmatmul.mubr.msk.bf16.vlgmr.msra.gmra.mxu1 %vm642_vm4, %v1804_v40 }
 0xb2a   : > { %2765 = vmatpush3.bf16.xpose.msra.mxu1 %v1934_v41  ;;  %2766 = vmatprep.mubr.msk.bf16.mxu1 %vm2970_vm1, %v2969_v1 }
 0xb2b   : > { %2776 = vmatprep.subr.bf16.mxu1 %v2969_v1 }
 0xb31   : > { %2767 = vmatmul.mubr.msk.bf16.vlgmr.msra.gmra.mxu1 %vm642_vm4, %v1927_v42 }
 0xb32   : > { %2780 = vmatprep.mubr.msk.bf16.mxu1 %vm2970_vm1, %v2969_v1 }
 0xbd9   : > { %v1600_v43 = vpop.f32.mrf.mxu1 }
 0xbda   : > { %v1607_v44 = vsel %vm690_vm5, %v1600_v43, -inf }
 0xbdb   : > { %1608 = vmax.xlane.f32.xlu1 %v1607_v44  ;;  %v2732_v45 = vpop.f32.mrf.mxu1 }
 0xbdd   : > { %v1603_v46 = vpop.f32.mrf.mxu1 }
 0xbde   : > { %v1610_v47 = vsel %vm694_vm6, %v1603_v46, -inf }
 0xbdf   : > { %1611 = vmax.xlane.f32.xlu0 %v1610_v47  ;;  %v2733_v48 = vpop.f32.mrf.mxu1 }
 0xbe1   : > { %v1724_v49 = vpop.f32.mrf.mxu1 }
 0xbe2   : > { %v1731_v50 = vsel %vm690_vm5, %v1724_v49, -inf }
 0xbe3   : > { %1732 = vmax.xlane.f32.xlu0 %v1731_v50  ;;  %v2744_v51 = vpop.f32.mrf.mxu1 }
 0xbe5   : > { %v1727_v52 = vpop.f32.mrf.mxu1 }
 0xbe6   : > { %v1734_v53 = vsel %vm694_vm6, %v1727_v52, -inf }
 0xbe7   : > { %1735 = vmax.xlane.f32.xlu1 %v1734_v53  ;;  %v2745_v54 = vpop.f32.mrf.mxu1 }
 0xbe9   : > { %v1847_v55 = vpop.f32.mrf.mxu1 }
 0xbea   : > { %v1854_v56 = vsel %vm690_vm5, %v1847_v55, -inf }
 0xbeb   : > { %1855 = vmax.xlane.f32.xlu0 %v1854_v56  ;;  %v2756_v57 = vpop.f32.mrf.mxu1 }
 0xbed   : > { %v3353_v58 = vpop.f32.mrf.mxu1 }
 0xbee   : > { %v1857_v0 = vsel %vm694_vm6, %v3353_v58, -inf }
 0xbef   : > { %v2757_v59 = vpop.f32.mrf.mxu1 }
 0xbf1   : > { %v3355_v60 = vpop.f32.mrf.mxu1 }
 0xbf2   : > { %v1977_v2 = vsel %vm690_vm5, %v3355_v60, -inf }
 0xbf3   : > { %v2768_v61 = vpop.f32.mrf.mxu1 }
 0xbf5   : > { %v3357_v62 = vpop.f32.mrf.mxu1 }
 0xbf6   : > { %v1980_v3 = vsel %vm694_vm6, %v3357_v62, -inf }
 0xbf7   : > { %v2769_v63 = vpop.f32.mrf.mxu1 }
 0xbf8   : > { %1750 = vrot.lane.b32.xlu1 %v3315_v29, %s3513_s25 }
 0xc01   : > { %1626 = vrot.lane.b32.xlu0 %v3315_v29, %s3514_s26 }
 0xc1c   : > { %1858 = vmax.xlane.f32.xlu1 %v1857_v0 }
 0xc20   : > { %1978 = vmax.xlane.f32.xlu0 %v1977_v2  ;;  %1981 = vmax.xlane.f32.xlu1 %v1980_v3 }
 0xc31   : > { %1873 = vrot.lane.b32.xlu1 %v3315_v29, %s3515_s27 }
 0xc36   : > { %1996 = vrot.lane.b32.xlu0 %v3315_v29, %s3516_s28 }
 0xc64   : > { %v1609_v4 = vpop.xlane.xlu1 %1608 }
 0xc65   : > { %v1613_v5 = vsub.f32 %v1600_v43, %v1609_v4 }
 0xc67   : > { %v1615_v6 = vmul.f32 1.442695, %v1613_v5 }
 0xc68   : > { %v1612_v7 = vpop.xlane.xlu0 %1611 }
 0xc69   : > { %v1614_v12 = vsub.f32 %v1603_v46, %v1612_v7  ;;  %2921 = vpow2.f32 %v1615_v6 }
 0xc6b   : > { %v1617_v8 = vmul.f32 1.442695, %v1614_v12 }
 0xc6c   : > { %v1733_v9 = vpop.xlane.xlu0 %1732 }
 0xc6d   : > { %2923 = vpow2.f32 %v1617_v8  ;;  %v1737_v13 = vsub.f32 %v1724_v49, %v1733_v9 }
 0xc6f   : > { %v1739_v10 = vmul.f32 1.442695, %v1737_v13 }
 0xc70   : > { %v1736_v11 = vpop.xlane.xlu1 %1735 }
 0xc71   : > { %2925 = vpow2.f32 %v1739_v10  ;;  %v1738_v14 = vsub.f32 %v1727_v52, %v1736_v11 }
 0xc73   : > { %v1741_v15 = vmul.f32 1.442695, %v1738_v14  ;;  %v2873_v14 = vld [vmem:[%s3493_s5 + $0x18] sm:$0xff]  }
 0xc74   : > { %v1856_v16 = vpop.xlane.xlu0 %1855  ;;  %v1751_v25 = vpop.permute.xlu1 %1750  ;;  %2777 = vmatpush3.bf16.msra.mxu1 %v2873_v14 }
 0xc75   : > { %2927 = vpow2.f32 %v1741_v15  ;;  %v1860_v17 = vsub.f32 %v1847_v55, %v1856_v16  ;;  %v1756_v27 = vsel %vm716_vm7, %v1751_v25, 0  ;;  %2778 = vmatprep.subr.bf16.mxu1 %v2969_v1 }
 0xc76   : > { %v2922_v22 = vpop.eup %2921 }
 0xc77   : > { %v1862_v20 = vmul.f32 1.442695, %v1860_v17  ;;  %v1619_v55 = vsel %vm690_vm5, %v2922_v22, 0.0 }
 0xc78   : > { %v1627_v21 = vpop.permute.xlu0 %1626 }
 0xc79   : > { %2929 = vpow2.f32 %v1862_v20  ;;  %v1632_v23 = vsel %vm716_vm7, %v1627_v21, 0 }
 0xc7a   : > { %v2924_v24 = vpop.eup %2923  ;;  %2735 = vmatpush3.bf16.msra.mxu0 %v1632_v23 }
 0xc7b   : > { %v1625_v26 = vpack.c.bf16 %v2924_v24, %v2922_v22  ;;  %2746 = vmatprep.subr.bf16.mxu0 %v2969_v1  ;;  %v1622_v57 = vsel %vm694_vm6, %v2924_v24, 0.0  ;;  %v2874_v24 = vld [vmem:[%s3493_s5 + $0x10] sm:$0xff]  }
 0xc7c   : > { %2779 = vmatpush3.bf16.msra.mxu1 %v2874_v24 }
 0xc7d   : > { %2737 = vmatmul.mubr.msk.bf16.vlgmr.msra.gmra.mxu0 %vm690_vm5, %v1625_v26  ;;  %2792 = vmatprep.subr.bf16.mxu1 %v2969_v1 }
 0xc7e   : > { %v2926_v28 = vpop.eup %2925  ;;  %2747 = vmatpush3.bf16.msra.mxu0 %v1756_v27  ;;  %2748 = vmatprep.mubr.msk.bf16.mxu0 %vm2970_vm1, %v2969_v1 }
 0xc7f   : > { %v1743_v29 = vsel %vm690_vm5, %v2926_v28, 0.0  ;;  %2758 = vmatprep.subr.bf16.mxu0 %v2969_v1 }
 0xc80   : > { %1744 = vadd.xlane.f32.xlu1 %v1743_v29 }
 0xc82   : > { %v2928_v30 = vpop.eup %2927 }
 0xc83   : > { %v1746_v31 = vsel %vm694_vm6, %v2928_v30, 0.0  ;;  %v1749_v32 = vpack.c.bf16 %v2928_v30, %v2926_v28 }
 0xc84   : > { %1747 = vadd.xlane.f32.xlu0 %v1746_v31 }
 0xc85   : > { %2749 = vmatmul.mubr.msk.bf16.vlgmr.msra.gmra.mxu0 %vm690_vm5, %v1749_v32 }
 0xc86   : > { %v2930_v33 = vpop.eup %2929  ;;  %2760 = vmatprep.mubr.msk.bf16.mxu0 %vm2970_vm1, %v2969_v1 }
 0xc87   : > { %v1866_v34 = vsel %vm690_vm5, %v2930_v33, 0.0 }
 0xc88   : > { %1867 = vadd.xlane.f32.xlu0 %v1866_v34 }
 0xca5   : > { %v1859_v35 = vpop.xlane.xlu1 %1858 }
 0xca6   : > { %v1861_v36 = vsub.f32 %v3353_v58, %v1859_v35 }
 0xca8   : > { %v1864_v37 = vmul.f32 1.442695, %v1861_v36 }
 0xca9   : > { %v1979_v38 = vpop.xlane.xlu0 %1978  ;;  %v1982_v39 = vpop.xlane.xlu1 %1981 }
 0xcaa   : > { %2931 = vpow2.f32 %v1864_v37  ;;  %v1983_v40 = vsub.f32 %v3355_v60, %v1979_v38  ;;  %v1984_v41 = vsub.f32 %v3357_v62, %v1982_v39 }
 0xcac   : > { %v1985_v42 = vmul.f32 1.442695, %v1983_v40  ;;  %v1987_v43 = vmul.f32 1.442695, %v1984_v41 }
 0xcad   : > { %v1874_v44 = vpop.permute.xlu1 %1873  ;;  %v1997_v47 = vpop.permute.xlu0 %1996 }
 0xcae   : > { %2933 = vpow2.f32 %v1985_v42  ;;  %v1879_v45 = vsel %vm716_vm7, %v1874_v44, 0  ;;  %v2002_v50 = vsel %vm716_vm7, %v1997_v47, 0 }
 0xcaf   : > { %2935 = vpow2.f32 %v1987_v43  ;;  %2759 = vmatpush3.bf16.msra.mxu0 %v1879_v45 }
 0xcb0   : > { %2770 = vmatprep.subr.bf16.mxu0 %v2969_v1 }
 0xcb7   : > { %v2932_v46 = vpop.eup %2931 }
 0xcb8   : > { %v1869_v48 = vsel %vm694_vm6, %v2932_v46, 0.0  ;;  %v1872_v49 = vpack.c.bf16 %v2932_v46, %v2930_v33 }
 0xcb9   : > { %1870 = vadd.xlane.f32.xlu1 %v1869_v48 }
 0xcba   : > { %2761 = vmatmul.mubr.msk.bf16.vlgmr.msra.gmra.mxu0 %vm690_vm5, %v1872_v49 }
 0xcbb   : > { %v2934_v51 = vpop.eup %2933  ;;  %2771 = vmatpush3.bf16.msra.mxu0 %v2002_v50  ;;  %2772 = vmatprep.mubr.msk.bf16.mxu0 %vm2970_vm1, %v2969_v1 }
 0xcbc   : > { %v2936_v52 = vpop.eup %2935  ;;  %v1989_v53 = vsel %vm690_vm5, %v2934_v51, 0.0  ;;  %2784 = vmatprep.subr.bf16.mxu0 %v2969_v1 }
 0xcbd   : > { %1990 = vadd.xlane.f32.xlu0 %v1989_v53  ;;  %v1992_v54 = vsel %vm694_vm6, %v2936_v52, 0.0  ;;  %v1995_v56 = vpack.c.bf16 %v2936_v52, %v2934_v51 }
 0xcbe   : > { %1993 = vadd.xlane.f32.xlu1 %v1992_v54 }
 0xcc1   : > { %1620 = vadd.xlane.f32.xlu0 %v1619_v55 }
 0xcc2   : > { %1623 = vadd.xlane.f32.xlu1 %v1622_v57  ;;  %2773 = vmatmul.mubr.msk.bf16.vlgmr.msra.gmra.mxu0 %vm690_vm5, %v1995_v56 }
 0xcc3   : > { %2788 = vmatprep.mubr.msk.bf16.mxu0 %vm2970_vm1, %v2969_v1 }
 0xd09   : > { %v1745_v58 = vpop.xlane.xlu1 %1744 }
 0xd0a   : > { %2937 = vrcp.f32 %v1745_v58  ;;  %v2525_v58 = vld [vmem:[%s3494_s6 + $0x1] ss:$0 sm:$0xff] }
 0xd0d   : > { %v1748_v59 = vpop.xlane.xlu0 %1747 }
 0xd0e   : > { %2939 = vrcp.f32 %v1748_v59 }
 0xd11   : > { %v1868_v9 = vpop.xlane.xlu0 %1867 }
 0xd12   : > { %2941 = vrcp.f32 %v1868_v9 }
 0xd17   : > { %v2938_v3 = vpop.eup %2937 }
 0xd1b   : > { %v2940_v4 = vpop.eup %2939 }
 0xd1f   : > { %v2942_v17 = vpop.eup %2941 }
 0xd3d   : > { %v1668_v60 = vpop.f32.mrf.mxu0 }
 0xd3f   : > { %v2738_v61 = vpop.f32.mrf.mxu0 }
 0xd41   : > { %v1671_v62 = vpop.f32.mrf.mxu0 }
 0xd42   : > { %v1871_v13 = vpop.xlane.xlu1 %1870 }
 0xd43   : > { %v2739_v63 = vpop.f32.mrf.mxu0  ;;  %2943 = vrcp.f32 %v1871_v13 }
 0xd45   : > { %v1792_v0 = vpop.f32.mrf.mxu0 }
 0xd46   : > { %v1801_v6 = vmul.f32 %v2938_v3, %v1792_v0  ;;  %v1991_v10 = vpop.xlane.xlu0 %1990 }
 0xd47   : > { %v2750_v2 = vpop.f32.mrf.mxu0  ;;  %v1994_v11 = vpop.xlane.xlu1 %1993  ;;  %2945 = vrcp.f32 %v1991_v10 }
 0xd48   : > { %2947 = vrcp.f32 %v1994_v11 }
 0xd49   : > { %v1795_v5 = vpop.f32.mrf.mxu0 }
 0xd4a   : > { %v1802_v7 = vmul.f32 %v2940_v4, %v1795_v5  ;;  %v1621_v36 = vpop.xlane.xlu0 %1620 }
 0xd4b   : > { %v2751_v12 = vpop.f32.mrf.mxu0  ;;  %v1624_v37 = vpop.xlane.xlu1 %1623  ;;  %2949 = vrcp.f32 %v1621_v36  ;;  %v2878_v36 = vld [vmem:[%s3499_s11 + $0x30] sm:$0xff]  }
 0xd4c   : > { %v2843_v8 = vpack.i.bf16 %v1802_v7, %v1801_v6  ;;  %2951 = vrcp.f32 %v1624_v37  ;;  %v2879_v37 = vld [vmem:[%s3499_s11 + $0x28] sm:$0xff]  }
 0xd4e   : > { %2844 = vrot.lane.b32.xlu0 %v2843_v8, %s3517_s29 }
 0xd50   : > { %v2944_v20 = vpop.eup %2943 }
 0xd54   : > { %v2946_v29 = vpop.eup %2945 }
 0xd55   : > { %v2948_v30 = vpop.eup %2947 }
 0xd58   : > { %v2950_v39 = vpop.eup %2949 }
 0xd59   : > { %v2952_v41 = vpop.eup %2951  ;;  %v1677_v46 = vmul.f32 %v2950_v39, %v1668_v60  ;;  %v2538_v39 = vld [vmem:[%s3498_s10 + $0x1] ss:$0 sm:$0xff] }
 0xd5a   : > { %v1678_v47 = vmul.f32 %v2952_v41, %v1671_v62 }
 0xd7a   : > { %v1915_v15 = vpop.f32.mrf.mxu0 }
 0xd7b   : > { %v1924_v22 = vmul.f32 %v2942_v17, %v1915_v15  ;;  %v2876_v15 = vld [vmem:[%s3497_s9 + $0x10] sm:$0xff]  }
 0xd7c   : > { %v2762_v16 = vpop.f32.mrf.mxu0 }
 0xd7d   : > { %v2877_v16 = vld [vmem:[%s3499_s11 + $0x38] sm:$0xff]  }
 0xd7e   : > { %v1918_v21 = vpop.f32.mrf.mxu0 }
 0xd7f   : > { %v1925_v23 = vmul.f32 %v2944_v20, %v1918_v21 }
 0xd80   : > { %v2763_v25 = vpop.f32.mrf.mxu0 }
 0xd81   : > { %v2848_v26 = vpack.i.bf16 %v1925_v23, %v1924_v22 }
 0xd82   : > { %v2038_v27 = vpop.f32.mrf.mxu0 }
 0xd83   : > { %2849 = vrot.lane.b32.xlu1 %v2848_v26, %s3518_s30  ;;  %v2047_v32 = vmul.f32 %v2946_v29, %v2038_v27  ;;  %v2531_v27 = vld [vmem:[%s3495_s7 + $0x1] ss:$0 sm:$0xff]  ;;  %s2564_s30 = sshll.u32 %s3521_s19, 4 }
 0xd84   : > { %v2774_v28 = vpop.f32.mrf.mxu0  ;;  %s494_s26 = scalar_lea.vmem %s3503_s15, %s2564_s30 }
 0xd86   : > { %v2041_v31 = vpop.f32.mrf.mxu0 }
 0xd87   : > { %v2048_v33 = vmul.f32 %v2948_v30, %v2041_v31  ;;  %v2532_v31 = vld [vmem:[%s3496_s8 + $0x1] ss:$0 sm:$0xff] }
 0xd88   : > { %v2775_v34 = vpop.f32.mrf.mxu0 }
 0xd89   : > { %v2853_v35 = vpack.i.bf16 %v2048_v33, %v2047_v32 }
 0xd8b   : > { %2854 = vrot.lane.b32.xlu1 %v2853_v35, %s3519_s24 }
 0xdc0   : > { %v2845_v38 = vpop.permute.xlu0 %2844 }
 0xdc1   : > { %v2847_v42 = vunpack.i.h.bf16 %v2845_v38  ;;  %v2846_v43 = vunpack.i.l.bf16 %v2845_v38  ;;  %v2880_v38 = vld [vmem:[%s3499_s11 + $0x20] sm:$0xff]  }
 0xdc3   : > { %v2074_v49 = vsel %vm642_vm4, %v1678_v47, %v2847_v42  ;;  %v2073_v50 = vsel %vm642_vm4, %v1677_v46, %v2846_v43 }
 0xdf5   : > { %v2850_v40 = vpop.permute.xlu1 %2849 }
 0xdf6   : > { %v2852_v44 = vunpack.i.h.bf16 %v2850_v40  ;;  %v2851_v45 = vunpack.i.l.bf16 %v2850_v40 }
 0xdf8   : > { %v2076_v53 = vsel %vm1161_vm8, %v2074_v49, %v2852_v44  ;;  %v2075_v54 = vsel %vm1161_vm8, %v2073_v50, %v2851_v45 }
 0xdfd   : > { %v2855_v48 = vpop.permute.xlu1 %2854 }
 0xdfe   : > { %v2857_v51 = vunpack.i.h.bf16 %v2855_v48  ;;  %v2856_v52 = vunpack.i.l.bf16 %v2855_v48 }
 0xe00   : > { %v2078_v55 = vsel %vm517_vm2, %v2076_v53, %v2857_v51  ;;  %v2077_v56 = vsel %vm517_vm2, %v2075_v54, %v2856_v52 }
 0xe01   : > { %v2079_v57 = vpack.c.bf16 %v2078_v55, %v2077_v56 }
 0xe03   : > { %2781 = vmatmul.mubr.msk.bf16.vlgmr.msra.gmra.mxu1 %vm590_vm3, %v2079_v57 }
 0xe04   : > { %2800 = vmatprep.mubr.msk.bf16.mxu1 %vm2970_vm1, %v2969_v1  ;;  %2793 = vmatpush3.bf16.msra.mxu1 %v2877_v16 }
 0xe05   : > { %2794 = vmatprep.subr.bf16.mxu1 %v2969_v1 }
 0xe08   : > { %2795 = vmatpush3.bf16.msra.mxu1 %v2878_v36 }
 0xe09   : > { %2796 = vmatprep.subr.bf16.mxu1 %v2969_v1 }
 0xe0c   : > { %2797 = vmatpush3.bf16.msra.mxu1 %v2879_v37 }
 0xe0d   : > { %2798 = vmatprep.subr.bf16.mxu1 %v2969_v1 }
 0xe10   : > { %2799 = vmatpush3.bf16.msra.mxu1 %v2880_v38 }
 0xec3   : > { %v2142_v59 = vpop.f32.mrf.mxu1 }
 0xec4   : > { %v2143_v60 = vadd.f32 %v2525_v58, %v2142_v59 }
 0xec5   : > { %v2782_v61 = vpop.f32.mrf.mxu1 }
 0xec6   : > { %v2149_v62 = vadd.f32 %v2143_v60, %v3303_v18 }
 0xec7   : > { %v2145_v63 = vpop.f32.mrf.mxu1 }
 0xec8   : > { %v2146_v0 = vadd.f32 %v2525_v58, %v2145_v63  ;;  %v2155_v2 = vsel %vm590_vm3, %v2149_v62, 0.0 }
 0xec9   : > { %2156 = vadd.xlane.f32.xlu0 %v2155_v2  ;;  %v2783_v3 = vpop.f32.mrf.mxu1 }
 0xeca   : > { %v2150_v4 = vadd.f32 %v2146_v0, %v3305_v19  ;;  %v2875_v19 = vld [vmem:[%s3497_s9 + $0x18] sm:$0xff]  }
 0xecb   : > { %2785 = vmatpush3.bf16.msra.mxu0 %v2875_v19 }
 0xecc   : > { %v2158_v5 = vsel %vm1241_vm9, %v2150_v4, 0.0  ;;  %2786 = vmatprep.subr.bf16.mxu0 %v2969_v1  ;;  %v2551_v1 = vld [vmem:[%s3500_s12 + $0x1] ss:$0 sm:$0xff] }
 0xecd   : > { %2159 = vadd.xlane.f32.xlu1 %v2158_v5 }
 0xecf   : > { %2787 = vmatpush3.bf16.msra.mxu0 %v2876_v15 }
 0xf52   : > { %v2157_v6 = vpop.xlane.xlu0 %2156 }
 0xf53   : > { %v2161_v7 = vmul.f32 0.03125, %v2157_v6 }
 0xf55   : > { %v2163_v12 = vsub.f32 %v2149_v62, %v2161_v7 }
 0xf56   : > { %v2160_v8 = vpop.xlane.xlu1 %2159 }
 0xf57   : > { %v2162_v9 = vmul.f32 0.03125, %v2160_v8  ;;  %v2165_v13 = vmul.f32 %v2163_v12, %v2163_v12 }
 0xf59   : > { %v2164_v10 = vsub.f32 %v2150_v4, %v2162_v9  ;;  %v2167_v18 = vsel %vm590_vm3, %v2165_v13, 0.0 }
 0xf5a   : > { %2168 = vadd.xlane.f32.xlu0 %v2167_v18  ;;  %v2559_v18 = vld [vmem:[%s3501_s13 + $0x1] ss:$0 sm:$0xff] }
 0xf5b   : > { %v2166_v11 = vmul.f32 %v2164_v10, %v2164_v10 }
 0xf5d   : > { %v2170_v14 = vsel %vm1241_vm9, %v2166_v11, 0.0 }
 0xf5e   : > { %2171 = vadd.xlane.f32.xlu0 %v2170_v14  ;;  %v2560_v14 = vld [vmem:[%s3502_s14 + $0x1] ss:$0 sm:$0xff] }
 0xfe3   : > { %v2169_v17 = vpop.xlane.xlu0 %2168 }
 0xfe4   : > { %v2173_v20 = vmul.f32 0.03125, %v2169_v17 }
 0xfe6   : > { %v2175_v21 = vadd.f32 1e-06, %v2173_v20 }
 0xfe7   : > { %v2172_v22 = vpop.xlane.xlu0 %2171 }
 0xfe8   : > { %2953 = vrsqrt.f32 %v2175_v21  ;;  %v2174_v23 = vmul.f32 0.03125, %v2172_v22 }
 0xfea   : > { %v2176_v24 = vadd.f32 1e-06, %v2174_v23 }
 0xfec   : > { %2955 = vrsqrt.f32 %v2176_v24 }
 0xff5   : > { %v2954_v25 = vpop.eup %2953 }
 0xff6   : > { %v2179_v26 = vmul.f32 %v2954_v25, %v2163_v12 }
 0xff8   : > { %v2187_v30 = vmul.f32 %v2531_v27, %v2179_v26 }
 0xff9   : > { %v2956_v28 = vpop.eup %2955 }
 0xffa   : > { %v2180_v29 = vmul.f32 %v2956_v28, %v2164_v10  ;;  %v2195_v33 = vadd.f32 %v2532_v31, %v2187_v30 }
 0xffc   : > { %v2188_v32 = vmul.f32 %v2531_v27, %v2180_v29 }
 0xffe   : > { %v2196_v34 = vadd.f32 %v2532_v31, %v2188_v32 }
0x1000   : > { %v2197_v35 = vpack.c.bf16 %v2196_v34, %v2195_v33 }
0x1002   : > { %2789 = vmatmul.mubr.msk.bf16.vlgmr.msra.gmra.mxu0 %vm590_vm3, %v2197_v35 }
0x10c2   : > { %v2260_v40 = vpop.f32.mrf.mxu0 }
0x10c3   : > { %v2261_v42 = vadd.f32 %v2538_v39, %v2260_v40 }
0x10c4   : > { %v2790_v41 = vpop.f32.mrf.mxu0 }
0x10c5   : > { %v2267_v46 = vmax.f32 %v2261_v42, 0.0 }
0x10c6   : > { %v2263_v43 = vpop.f32.mrf.mxu0 }
0x10c7   : > { %v2264_v44 = vadd.f32 %v2538_v39, %v2263_v43 }
0x10c8   : > { %v2791_v45 = vpop.f32.mrf.mxu0 }
0x10c9   : > { %v2268_v47 = vmax.f32 %v2264_v44, 0.0 }
0x10cb   : > { %v2269_v48 = vpack.c.bf16 %v2268_v47, %v2267_v46 }
0x10cd   : > { %2801 = vmatmul.mubr.msk.bf16.vlgmr.msra.gmra.mxu1 %vm1392_vm10, %v2269_v48 }
0x118d   : > { %v2348_v49 = vpop.f32.mrf.mxu1 }
0x118e   : > { %v2349_v50 = vadd.f32 %v2551_v1, %v2348_v49 }
0x118f   : > { %v2802_v51 = vpop.f32.mrf.mxu1 }
0x1190   : > { %v2355_v52 = vadd.f32 %v2349_v50, %v2195_v33 }
0x1191   : > { %v2351_v53 = vpop.f32.mrf.mxu1 }
0x1192   : > { %v2352_v54 = vadd.f32 %v2551_v1, %v2351_v53  ;;  %v2361_v55 = vsel %vm590_vm3, %v2355_v52, 0.0 }
0x1193   : > { %2362 = vadd.xlane.f32.xlu1 %v2361_v55  ;;  %v2803_v56 = vpop.f32.mrf.mxu1 }
0x1194   : > { %v2356_v57 = vadd.f32 %v2352_v54, %v2196_v34 }
0x1196   : > { %v2364_v58 = vsel %vm1241_vm9, %v2356_v57, 0.0 }
0x1197   : > { %2365 = vadd.xlane.f32.xlu0 %v2364_v58 }
0x121c   : > { %v2363_v59 = vpop.xlane.xlu1 %2362 }
0x121d   : > { %v2367_v60 = vmul.f32 0.03125, %v2363_v59 }
0x121f   : > { %v2369_v61 = vsub.f32 %v2355_v52, %v2367_v60 }
0x1220   : > { %v2366_v62 = vpop.xlane.xlu0 %2365 }
0x1221   : > { %v2368_v63 = vmul.f32 0.03125, %v2366_v62  ;;  %v2371_v0 = vmul.f32 %v2369_v61, %v2369_v61 }
0x1223   : > { %v2370_v2 = vsub.f32 %v2356_v57, %v2368_v63  ;;  %v2373_v3 = vsel %vm590_vm3, %v2371_v0, 0.0 }
0x1224   : > { %2374 = vadd.xlane.f32.xlu1 %v2373_v3 }
0x1225   : > { %v2372_v4 = vmul.f32 %v2370_v2, %v2370_v2 }
0x1227   : > { %v2376_v5 = vsel %vm1241_vm9, %v2372_v4, 0.0 }
0x1228   : > { %2377 = vadd.xlane.f32.xlu0 %v2376_v5 }
0x12ad   : > { %v2375_v6 = vpop.xlane.xlu1 %2374 }
0x12ae   : > { %v2379_v7 = vmul.f32 0.03125, %v2375_v6 }
0x12b0   : > { %v2381_v12 = vadd.f32 1e-06, %v2379_v7 }
0x12b1   : > { %v2378_v8 = vpop.xlane.xlu0 %2377 }
0x12b2   : > { %2957 = vrsqrt.f32 %v2381_v12  ;;  %v2380_v9 = vmul.f32 0.03125, %v2378_v8 }
0x12b4   : > { %v2382_v13 = vadd.f32 1e-06, %v2380_v9 }
0x12b6   : > { %2959 = vrsqrt.f32 %v2382_v13 }
0x12bf   : > { %v2958_v10 = vpop.eup %2957 }
0x12c0   : > { %v2385_v11 = vmul.f32 %v2958_v10, %v2369_v61 }
0x12c2   : > { %v2393_v19 = vmul.f32 %v2559_v18, %v2385_v11 }
0x12c3   : > { %v2960_v15 = vpop.eup %2959 }
0x12c4   : > { %v2401_v16 = vadd.f32 %v2560_v14, %v2393_v19  ;;  %v2386_v17 = vmul.f32 %v2960_v15, %v2370_v2 }
0x12c6   : > { %2403 = vst.msk [vmem:[%s494_s26] sm:$0xff] %vm590_vm3, %v2401_v16  ;;  %v2394_v20 = vmul.f32 %v2559_v18, %v2386_v17 }
0x12c8   : > { %v2402_v21 = vadd.f32 %v2560_v14, %v2394_v20 }
0x12ca   : > { %2404 = vst.msk [vmem:[%s494_s26 + $0x8] sm:$0x3f] %vm1241_vm9, %v2402_v21 }
0x12cb PF: > { %s25_s18 = sadd.s32 1, %s2967_s18  }
0x12cc   : > { %p22_p4 = scmp.ge.s32.totalorder %s25_s18, 4  }
0x12ce   :  { %24 = sbr.rel (!%p22_p4) target bundleno = 1 (0x1), region = 122 }

</bundles_post_ra>
